<compile_context>
chip_gen: v5e
topology: v5e:2x2
jax: 0.10.0
libtpu: 0.0.40
codegen_flags: <defaults>
</compile_context>

<pallas_src>
import functools

import jax
import jax.numpy as jnp
from jax import lax
from jax.experimental import pallas as pl
from jax.experimental.pallas import tpu as pltpu


def c3_kernel(x_ref, w_ref, b_ref, m_ref, o_ref, xp_ref, *,
              H, W, C1, NB, compute_dtype):
    """One grid step = NB batch elements x one output-channel tile.

    x_ref:  (NB, C1, HW)          flattened NCHW input block (ignores oc axis)
    w_ref:  (9, OC_T, C1)         BN-scale-folded weights, tap-major, compute_dtype
    b_ref:  (OC_T, 1)             folded BN shift (f32)
    m_ref:  (2, HW)               precomputed w-boundary masks (f32 {0,1})
    o_ref:  (NB, OC_T, HW)        flattened NCHW output block
    xp_ref: (NB*C1, HW + 2*(W+1)) zero-padded staging scratch (per-core, persists)
    """
    HW = H * W
    PAD = W + 1
    cdt = compute_dtype

    # (Re)stage the batch block only when it changes.  The oc axis is the
    # innermost grid axis and marked "arbitrary", so every batch block starts
    # at oc == 0 on whichever TensorCore runs it -> no cross-core / stale-VMEM
    # hazard (unlike the old program_id(0)==0 pad init).
    @pl.when(pl.program_id(1) == 0)
    def _stage():
        zpad = jnp.zeros((NB * C1, PAD), xp_ref.dtype)
        xp_ref[:, 0:PAD] = zpad                          # h-halo (top) zeros
        xp_ref[:, PAD + HW:PAD + HW + PAD] = zpad        # h-halo (bottom) zeros
        # TODO(synk): on v7x, DMA x straight into this interior
        # (memory_space=pl.ANY + manual double buffer) to drop this
        # VMEM->VMEM copy; kept as a plain store here for robustness.
        for b in range(NB):
            xp_ref[b * C1:(b + 1) * C1, PAD:PAD + HW] = x_ref[b]

    # Precomputed column masks (constant-index input; loaded once, no
    # per-step iota/mod/compare).
    m_left = m_ref[0:1, :]      # 1.0 where the w-1 neighbour is inside the row
    m_right = m_ref[1:2, :]     # 1.0 where the w+1 neighbour is inside the row

    # Per-tap weight tiles, hoisted out of the batch loop.
    w_taps = [w_ref[t] for t in range(9)]                # each (OC_T, C1)
    bias = b_ref[...]                                    # (OC_T, 1) f32

    taps = [(dh, dw) for dh in (-1, 0, 1) for dw in (-1, 0, 1)]

    for b in range(NB):
        r0 = b * C1
        acc = None
        # Per-tap MXU accumulation: no (9*C1, HW) staging buffer, no extra
        # store traffic, and per-tap K == C1 matches the 256-wide MXU at
        # production channel counts.  (For tiny C1 a single stacked
        # K=9*C1 contraction would pack the MXU tile slightly better, but the
        # per-tap form is uniform and keeps everything in vregs.)
        for t, (dh, dw) in enumerate(taps):
            s = dh * W + dw
            xs = xp_ref[r0:r0 + C1, PAD + s:PAD + s + HW]   # (C1, HW)
            if dw == -1:
                xs = xs * m_left
            elif dw == 1:
                xs = xs * m_right
            xs = xs.astype(cdt)     # bf16 here -> full-rate MXU on v6e/v7x
            part = jnp.dot(w_taps[t], xs, preferred_element_type=jnp.float32)
            acc = part if acc is None else acc + part
        # Folded-BN shift + SiLU epilogue (EUP sigmoid + VPU mul).
        y = acc + bias
        y = y * jax.nn.sigmoid(y)
        o_ref[b] = y.astype(o_ref.dtype)


def _fold_bn(gamma, beta, mean, var, eps):
    scale = gamma / jnp.sqrt(var + eps)
    shift = beta - mean * scale
    return scale, shift


def c3_forward(x, w3x3, w1x3, w3x1, bn1, bn2, bn3, eps=1e-5, *,
               compute_dtype=jnp.float32, nb=None, oc_tile=None):
    """x: (N, C1, H, W).  w3x3: (C2, C1, 3, 3), w1x3: (C2, C1, 1, 3),
    w3x1: (C2, C1, 3, 1).  bn_i = (gamma, beta, running_mean, running_var).
    Returns concat([cv1, cv2, cv3], channel) -> (N, 3*C2, H, W).

    compute_dtype=jnp.bfloat16 gives full-rate MXU on v6e/v7x (BN-folded
    constant weights); the float32 default keeps <=1e-4 accuracy."""
    N, C1, H, W = x.shape
    C2 = w3x3.shape[0]
    OC = 3 * C2
    HW = H * W
    PAD = W + 1

    # Free row-major reshape: no wrapper transpose, no extra HBM pass.
    x_flat = x.reshape(N, C1, HW)

    s1, b1 = _fold_bn(*bn1, eps)
    s2, b2 = _fold_bn(*bn2, eps)
    s3, b3 = _fold_bn(*bn3, eps)

    # BN-scale-folded weights as (C2, 3, 3, C1) (dh, dw, in-channel) tap grids;
    # the 1x3 / 3x1 branches only populate the taps their stencils use.
    wb1 = jnp.transpose(w3x3 * s1[:, None, None, None], (0, 2, 3, 1))
    wb2 = jnp.transpose(w1x3 * s2[:, None, None, None], (0, 2, 3, 1))
    wb2 = jnp.pad(wb2, ((0, 0), (1, 1), (0, 0), (0, 0)))        # dh == 0 only
    wb3 = jnp.transpose(w3x1 * s3[:, None, None, None], (0, 2, 3, 1))
    wb3 = jnp.pad(wb3, ((0, 0), (0, 0), (1, 1), (0, 0)))        # dw == 0 only

    w_mat = jnp.concatenate([wb1, wb2, wb3], axis=0)            # (OC, 3, 3, C1)
    w_mat = w_mat.reshape(OC, 9, C1).transpose(1, 0, 2)         # (9, OC, C1)
    w_mat = w_mat.astype(compute_dtype)
    shift = jnp.concatenate([b1, b2, b3]).reshape(OC, 1).astype(jnp.float32)

    # w-boundary masks, precomputed once (hoisted out of the kernel body).
    col = jnp.arange(HW, dtype=jnp.int32) % W
    masks = jnp.stack([col >= 1, col <= W - 2]).astype(jnp.float32)   # (2, HW)

    # --- tiling -----------------------------------------------------------
    if nb is None:                        # batch elements per grid step
        nb = max(1, min(N, (4 << 20) // max(1, C1 * HW * x.dtype.itemsize)))
        while N % nb:
            nb -= 1
    assert N % nb == 0
    if oc_tile is None:                   # output channels per grid step
        oc_tile = 256 if (OC > 256 and OC % 256 == 0) else OC
    assert OC % oc_tile == 0
    n_oc = OC // oc_tile
    grid = (N // nb, n_oc)

    # VMEM demand of the chosen tiles (double-buffered ins/outs + scratch);
    # derive the limit from it instead of a fixed number.
    cbytes = jnp.dtype(compute_dtype).itemsize
    xbytes = x.dtype.itemsize
    vm_est = (2 * nb * C1 * HW * xbytes            # x blocks
              + 2 * 9 * oc_tile * C1 * cbytes      # weight blocks
              + 2 * oc_tile * 4                    # bias blocks
              + 2 * 2 * HW * 4                     # mask blocks
              + 2 * nb * oc_tile * HW * xbytes     # out blocks
              + nb * C1 * (HW + 2 * PAD) * xbytes) # padded staging scratch
    vmem_limit = int(min(100 << 20, max(32 << 20, 2 * vm_est)))

    kernel = functools.partial(c3_kernel, H=H, W=W, C1=C1, NB=nb,
                               compute_dtype=compute_dtype)
    out_flat = pl.pallas_call(
        kernel,
        out_shape=jax.ShapeDtypeStruct((N, OC, HW), x.dtype),
        grid_spec=pltpu.PrefetchScalarGridSpec(
            num_scalar_prefetch=0,
            grid=grid,
            in_specs=[
                pl.BlockSpec((nb, C1, HW), lambda n, oc: (n, 0, 0)),
                pl.BlockSpec((9, oc_tile, C1), lambda n, oc: (0, oc, 0)),
                pl.BlockSpec((oc_tile, 1), lambda n, oc: (oc, 0)),
                pl.BlockSpec((2, HW), lambda n, oc: (0, 0)),
            ],
            out_specs=pl.BlockSpec((nb, oc_tile, HW), lambda n, oc: (n, oc, 0)),
            scratch_shapes=[
                pltpu.VMEM((nb * C1, HW + 2 * PAD), x.dtype),
            ],
        ),
        compiler_params=pltpu.CompilerParams(
            dimension_semantics=("parallel", "arbitrary"),
            vmem_limit_bytes=vmem_limit),
    )(x_flat, w_mat, shift, masks)

    # Free reshape back to NCHW.
    return out_flat.reshape(N, OC, H, W)


def reference_forward(x, w3x3, w1x3, w3x1, bn1, bn2, bn3, eps=1e-5):
    """Pure-JAX reference of the same (eval-mode) C3 forward pass."""
    def branch(w, pad, bn):
        gamma, beta, mean, var = bn
        y = lax.conv_general_dilated(
            x, w, window_strides=(1, 1), padding=pad,
            dimension_numbers=("NCHW", "OIHW", "NCHW"))
        scale = gamma / jnp.sqrt(var + eps)
        y = y * scale.reshape(1, -1, 1, 1) + (beta - mean * scale).reshape(1, -1, 1, 1)
        return y * jax.nn.sigmoid(y)

    y1 = branch(w3x3, ((1, 1), (1, 1)), bn1)
    y2 = branch(w1x3, ((0, 0), (1, 1)), bn2)
    y3 = branch(w3x1, ((1, 1), (0, 0)), bn3)
    return jnp.concatenate([y1, y2, y3], axis=1)


if __name__ == "__main__":
    # Small deterministic shapes consistent with the module.
    N, C1, C2, H, W = 4, 4, 8, 16, 16

    key = jax.random.PRNGKey(0)
    keys = jax.random.split(key, 16)

    x = jax.random.normal(keys[0], (N, C1, H, W), dtype=jnp.float32)
    w3x3 = jax.random.normal(keys[1], (C2, C1, 3, 3), dtype=jnp.float32) * 0.1
    w1x3 = jax.random.normal(keys[2], (C2, C1, 1, 3), dtype=jnp.float32) * 0.1
    w3x1 = jax.random.normal(keys[3], (C2, C1, 3, 1), dtype=jnp.float32) * 0.1

    def make_bn(k0, k1, k2, k3):
        gamma = 1.0 + 0.1 * jax.random.normal(k0, (C2,), dtype=jnp.float32)
        beta = 0.1 * jax.random.normal(k1, (C2,), dtype=jnp.float32)
        mean = 0.1 * jax.random.normal(k2, (C2,), dtype=jnp.float32)
        var = 1.0 + 0.1 * jax.random.uniform(k3, (C2,), dtype=jnp.float32)
        return gamma, beta, mean, var

    bn1 = make_bn(*keys[4:8])
    bn2 = make_bn(*keys[8:12])
    bn3 = make_bn(*keys[12:16])

    ref = reference_forward(x, w3x3, w1x3, w3x1, bn1, bn2, bn3)
    ref = jax.block_until_ready(ref)

    # f32 path (tight tolerance): nb=2 -> grid (2, 1), two images per step.
    out = c3_forward(x, w3x3, w1x3, w3x1, bn1, bn2, bn3, nb=2)
    out = jax.block_until_ready(out)
    assert out.shape == (N, 3 * C2, H, W)
    assert jnp.allclose(out, ref, atol=1e-4, rtol=1e-4)

    # bf16-operand MXU path (v6e/v7x full-rate path): looser tolerance.
    out_bf = c3_forward(x, w3x3, w1x3, w3x1, bn1, bn2, bn3,
                        compute_dtype=jnp.bfloat16, nb=2)
    out_bf = jax.block_until_ready(out_bf)
    assert out_bf.shape == (N, 3 * C2, H, W)
    assert jnp.allclose(out_bf, ref, atol=5e-2, rtol=5e-2)

    print("KERNEL_OK")
</pallas_src>

<mosaic_0001>
module attributes {stable_mosaic.version = 11 : i64} {
  func.func @c3_kernel(%arg0: i32, %arg1: i32, %arg2: memref<2x4x256xf32, #tpu.memory_space<vmem>>, %arg3: memref<9x24x4xf32, #tpu.memory_space<vmem>>, %arg4: memref<24x1xf32, #tpu.memory_space<vmem>>, %arg5: memref<2x256xf32, #tpu.memory_space<vmem>>, %arg6: memref<2x24x256xf32, #tpu.memory_space<vmem>>, %arg7: memref<8x290xf32, #tpu.memory_space<vmem>>) attributes {dimension_semantics = [#tpu.dimension_semantics<parallel>, #tpu.dimension_semantics<arbitrary>], iteration_bounds = array<i64: 2, 1>, scalar_prefetch = 0 : i64, scratch_operands = 1 : i64, tpu.core_type = #tpu.core_type<tc>, window_params = [{transform_indices = @transform_0, window_bounds = array<i64: 2, 4, 256>}, {transform_indices = @transform_1, window_bounds = array<i64: 9, 24, 4>}, {transform_indices = @transform_2, window_bounds = array<i64: 24, 1>}, {pipeline_mode = #tpu.pipeline_mode<synchronous>, transform_indices = @transform_3, window_bounds = array<i64: 2, 256>}, {transform_indices = @transform_4, window_bounds = array<i64: 2, 24, 256>}]} {
    %c0_i32 = arith.constant 0 : i32
    %0 = arith.cmpi eq, %arg1, %c0_i32 : i32
    %1 = arith.extui %0 : i1 to i32
    %c0_i32_0 = arith.constant 0 : i32
    %2 = arith.cmpi ne, %1, %c0_i32_0 : i32
    scf.if %2 {
      %cst_80 = arith.constant 0.000000e+00 : f32
      %122 = vector.broadcast %cst_80 : f32 to vector<8x17xf32>
      %c0_81 = arith.constant 0 : index
      %c0_82 = arith.constant 0 : index
      %123 = vector.load %arg7[%c0_81, %c0_82] : memref<8x290xf32, #tpu.memory_space<vmem>>, vector<8x17xf32>
      tpu.vector_store %arg7[%c0_81, %c0_82], %122 {strides = array<i32>} : memref<8x290xf32, #tpu.memory_space<vmem>>, vector<8x17xf32>,
      %c0_83 = arith.constant 0 : index
      %c273 = arith.constant 273 : index
      %124 = vector.load %arg7[%c0_83, %c273] : memref<8x290xf32, #tpu.memory_space<vmem>>, vector<8x17xf32>
      tpu.vector_store %arg7[%c0_83, %c273], %122 {strides = array<i32>} : memref<8x290xf32, #tpu.memory_space<vmem>>, vector<8x17xf32>,
      %c0_84 = arith.constant 0 : index
      %c0_85 = arith.constant 0 : index
      %c0_86 = arith.constant 0 : index
      %125 = vector.load %arg2[%c0_84, %c0_85, %c0_86] : memref<2x4x256xf32, #tpu.memory_space<vmem>>, vector<1x4x256xf32>
      %126 = vector.shape_cast %125 : vector<1x4x256xf32> to vector<4x256xf32>
      %c0_87 = arith.constant 0 : index
      %c17_88 = arith.constant 17 : index
      %127 = vector.load %arg7[%c0_87, %c17_88] : memref<8x290xf32, #tpu.memory_space<vmem>>, vector<4x256xf32>
      tpu.vector_store %arg7[%c0_87, %c17_88], %126 {strides = array<i32>} : memref<8x290xf32, #tpu.memory_space<vmem>>, vector<4x256xf32>,
      %c1_89 = arith.constant 1 : index
      %c0_90 = arith.constant 0 : index
      %c0_91 = arith.constant 0 : index
      %128 = vector.load %arg2[%c1_89, %c0_90, %c0_91] : memref<2x4x256xf32, #tpu.memory_space<vmem>>, vector<1x4x256xf32>
      %129 = vector.shape_cast %128 : vector<1x4x256xf32> to vector<4x256xf32>
      %c4_92 = arith.constant 4 : index
      %c17_93 = arith.constant 17 : index
      %130 = vector.load %arg7[%c4_92, %c17_93] : memref<8x290xf32, #tpu.memory_space<vmem>>, vector<4x256xf32>
      tpu.vector_store %arg7[%c4_92, %c17_93], %129 {strides = array<i32>} : memref<8x290xf32, #tpu.memory_space<vmem>>, vector<4x256xf32>,
    } else {
    }
    %c0 = arith.constant 0 : index
    %c0_1 = arith.constant 0 : index
    %3 = vector.load %arg5[%c0, %c0_1] : memref<2x256xf32, #tpu.memory_space<vmem>>, vector<1x256xf32>
    %c1 = arith.constant 1 : index
    %c0_2 = arith.constant 0 : index
    %4 = vector.load %arg5[%c1, %c0_2] : memref<2x256xf32, #tpu.memory_space<vmem>>, vector<1x256xf32>
    %c0_3 = arith.constant 0 : index
    %c0_4 = arith.constant 0 : index
    %c0_5 = arith.constant 0 : index
    %5 = vector.load %arg3[%c0_3, %c0_4, %c0_5] : memref<9x24x4xf32, #tpu.memory_space<vmem>>, vector<1x24x4xf32>
    %6 = vector.shape_cast %5 : vector<1x24x4xf32> to vector<24x4xf32>
    %c1_6 = arith.constant 1 : index
    %c0_7 = arith.constant 0 : index
    %c0_8 = arith.constant 0 : index
    %7 = vector.load %arg3[%c1_6, %c0_7, %c0_8] : memref<9x24x4xf32, #tpu.memory_space<vmem>>, vector<1x24x4xf32>
    %8 = vector.shape_cast %7 : vector<1x24x4xf32> to vector<24x4xf32>
    %c2 = arith.constant 2 : index
    %c0_9 = arith.constant 0 : index
    %c0_10 = arith.constant 0 : index
    %9 = vector.load %arg3[%c2, %c0_9, %c0_10] : memref<9x24x4xf32, #tpu.memory_space<vmem>>, vector<1x24x4xf32>
    %10 = vector.shape_cast %9 : vector<1x24x4xf32> to vector<24x4xf32>
    %c3 = arith.constant 3 : index
    %c0_11 = arith.constant 0 : index
    %c0_12 = arith.constant 0 : index
    %11 = vector.load %arg3[%c3, %c0_11, %c0_12] : memref<9x24x4xf32, #tpu.memory_space<vmem>>, vector<1x24x4xf32>
    %12 = vector.shape_cast %11 : vector<1x24x4xf32> to vector<24x4xf32>
    %c4 = arith.constant 4 : index
    %c0_13 = arith.constant 0 : index
    %c0_14 = arith.constant 0 : index
    %13 = vector.load %arg3[%c4, %c0_13, %c0_14] : memref<9x24x4xf32, #tpu.memory_space<vmem>>, vector<1x24x4xf32>
    %14 = vector.shape_cast %13 : vector<1x24x4xf32> to vector<24x4xf32>
    %c5 = arith.constant 5 : index
    %c0_15 = arith.constant 0 : index
    %c0_16 = arith.constant 0 : index
    %15 = vector.load %arg3[%c5, %c0_15, %c0_16] : memref<9x24x4xf32, #tpu.memory_space<vmem>>, vector<1x24x4xf32>
    %16 = vector.shape_cast %15 : vector<1x24x4xf32> to vector<24x4xf32>
    %c6 = arith.constant 6 : index
    %c0_17 = arith.constant 0 : index
    %c0_18 = arith.constant 0 : index
    %17 = vector.load %arg3[%c6, %c0_17, %c0_18] : memref<9x24x4xf32, #tpu.memory_space<vmem>>, vector<1x24x4xf32>
    %18 = vector.shape_cast %17 : vector<1x24x4xf32> to vector<24x4xf32>
    %c7 = arith.constant 7 : index
    %c0_19 = arith.constant 0 : index
    %c0_20 = arith.constant 0 : index
    %19 = vector.load %arg3[%c7, %c0_19, %c0_20] : memref<9x24x4xf32, #tpu.memory_space<vmem>>, vector<1x24x4xf32>
    %20 = vector.shape_cast %19 : vector<1x24x4xf32> to vector<24x4xf32>
    %c8 = arith.constant 8 : index
    %c0_21 = arith.constant 0 : index
    %c0_22 = arith.constant 0 : index
    %21 = vector.load %arg3[%c8, %c0_21, %c0_22] : memref<9x24x4xf32, #tpu.memory_space<vmem>>, vector<1x24x4xf32>
    %22 = vector.shape_cast %21 : vector<1x24x4xf32> to vector<24x4xf32>
    %c0_23 = arith.constant 0 : index
    %c0_24 = arith.constant 0 : index
    %23 = vector.load %arg4[%c0_23, %c0_24] : memref<24x1xf32, #tpu.memory_space<vmem>>, vector<24x1xf32>
    %c0_25 = arith.constant 0 : index
    %c0_26 = arith.constant 0 : index
    %24 = vector.load %arg7[%c0_25, %c0_26] : memref<8x290xf32, #tpu.memory_space<vmem>>, vector<4x256xf32>
    %25 = vector.broadcast %3 : vector<1x256xf32> to vector<4x256xf32>
    %26 = arith.mulf %24, %25 : vector<4x256xf32>
    %cst = arith.constant dense<0.000000e+00> : vector<24x256xf32>
    %27 = tpu.matmul %6, %26, %cst {dimension_numbers = #tpu.dot_dimension_numbers<[1], [0], [0], [1], [0, 0, 1, 1], [], []>} : vector<24x4xf32>, vector<4x256xf32>, vector<24x256xf32> -> vector<24x256xf32>
    %c0_27 = arith.constant 0 : index
    %c1_28 = arith.constant 1 : index
    %28 = vector.load %arg7[%c0_27, %c1_28] : memref<8x290xf32, #tpu.memory_space<vmem>>, vector<4x256xf32>
    %cst_29 = arith.constant dense<0.000000e+00> : vector<24x256xf32>
    %29 = tpu.matmul %8, %28, %cst_29 {dimension_numbers = #tpu.dot_dimension_numbers<[1], [0], [0], [1], [0, 0, 1, 1], [], []>} : vector<24x4xf32>, vector<4x256xf32>, vector<24x256xf32> -> vector<24x256xf32>
    %30 = arith.addf %27, %29 : vector<24x256xf32>
    %c0_30 = arith.constant 0 : index
    %c2_31 = arith.constant 2 : index
    %31 = vector.load %arg7[%c0_30, %c2_31] : memref<8x290xf32, #tpu.memory_space<vmem>>, vector<4x256xf32>
    %32 = vector.broadcast %4 : vector<1x256xf32> to vector<4x256xf32>
    %33 = arith.mulf %31, %32 : vector<4x256xf32>
    %cst_32 = arith.constant dense<0.000000e+00> : vector<24x256xf32>
    %34 = tpu.matmul %10, %33, %cst_32 {dimension_numbers = #tpu.dot_dimension_numbers<[1], [0], [0], [1], [0, 0, 1, 1], [], []>} : vector<24x4xf32>, vector<4x256xf32>, vector<24x256xf32> -> vector<24x256xf32>
    %35 = arith.addf %30, %34 : vector<24x256xf32>
    %c0_33 = arith.constant 0 : index
    %c16 = arith.constant 16 : index
    %36 = vector.load %arg7[%c0_33, %c16] : memref<8x290xf32, #tpu.memory_space<vmem>>, vector<4x256xf32>
    %37 = vector.broadcast %3 : vector<1x256xf32> to vector<4x256xf32>
    %38 = arith.mulf %36, %37 : vector<4x256xf32>
    %cst_34 = arith.constant dense<0.000000e+00> : vector<24x256xf32>
    %39 = tpu.matmul %12, %38, %cst_34 {dimension_numbers = #tpu.dot_dimension_numbers<[1], [0], [0], [1], [0, 0, 1, 1], [], []>} : vector<24x4xf32>, vector<4x256xf32>, vector<24x256xf32> -> vector<24x256xf32>
    %40 = arith.addf %35, %39 : vector<24x256xf32>
    %c0_35 = arith.constant 0 : index
    %c17 = arith.constant 17 : index
    %41 = vector.load %arg7[%c0_35, %c17] : memref<8x290xf32, #tpu.memory_space<vmem>>, vector<4x256xf32>
    %cst_36 = arith.constant dense<0.000000e+00> : vector<24x256xf32>
    %42 = tpu.matmul %14, %41, %cst_36 {dimension_numbers = #tpu.dot_dimension_numbers<[1], [0], [0], [1], [0, 0, 1, 1], [], []>} : vector<24x4xf32>, vector<4x256xf32>, vector<24x256xf32> -> vector<24x256xf32>
    %43 = arith.addf %40, %42 : vector<24x256xf32>
    %c0_37 = arith.constant 0 : index
    %c18 = arith.constant 18 : index
    %44 = vector.load %arg7[%c0_37, %c18] : memref<8x290xf32, #tpu.memory_space<vmem>>, vector<4x256xf32>
    %45 = vector.broadcast %4 : vector<1x256xf32> to vector<4x256xf32>
    %46 = arith.mulf %44, %45 : vector<4x256xf32>
    %cst_38 = arith.constant dense<0.000000e+00> : vector<24x256xf32>
    %47 = tpu.matmul %16, %46, %cst_38 {dimension_numbers = #tpu.dot_dimension_numbers<[1], [0], [0], [1], [0, 0, 1, 1], [], []>} : vector<24x4xf32>, vector<4x256xf32>, vector<24x256xf32> -> vector<24x256xf32>
    %48 = arith.addf %43, %47 : vector<24x256xf32>
    %c0_39 = arith.constant 0 : index
    %c32 = arith.constant 32 : index
    %49 = vector.load %arg7[%c0_39, %c32] : memref<8x290xf32, #tpu.memory_space<vmem>>, vector<4x256xf32>
    %50 = vector.broadcast %3 : vector<1x256xf32> to vector<4x256xf32>
    %51 = arith.mulf %49, %50 : vector<4x256xf32>
    %cst_40 = arith.constant dense<0.000000e+00> : vector<24x256xf32>
    %52 = tpu.matmul %18, %51, %cst_40 {dimension_numbers = #tpu.dot_dimension_numbers<[1], [0], [0], [1], [0, 0, 1, 1], [], []>} : vector<24x4xf32>, vector<4x256xf32>, vector<24x256xf32> -> vector<24x256xf32>
    %53 = arith.addf %48, %52 : vector<24x256xf32>
    %c0_41 = arith.constant 0 : index
    %c33 = arith.constant 33 : index
    %54 = vector.load %arg7[%c0_41, %c33] : memref<8x290xf32, #tpu.memory_space<vmem>>, vector<4x256xf32>
    %cst_42 = arith.constant dense<0.000000e+00> : vector<24x256xf32>
    %55 = tpu.matmul %20, %54, %cst_42 {dimension_numbers = #tpu.dot_dimension_numbers<[1], [0], [0], [1], [0, 0, 1, 1], [], []>} : vector<24x4xf32>, vector<4x256xf32>, vector<24x256xf32> -> vector<24x256xf32>
    %56 = arith.addf %53, %55 : vector<24x256xf32>
    %c0_43 = arith.constant 0 : index
    %c34 = arith.constant 34 : index
    %57 = vector.load %arg7[%c0_43, %c34] : memref<8x290xf32, #tpu.memory_space<vmem>>, vector<4x256xf32>
    %58 = vector.broadcast %4 : vector<1x256xf32> to vector<4x256xf32>
    %59 = arith.mulf %57, %58 : vector<4x256xf32>
    %cst_44 = arith.constant dense<0.000000e+00> : vector<24x256xf32>
    %60 = tpu.matmul %22, %59, %cst_44 {dimension_numbers = #tpu.dot_dimension_numbers<[1], [0], [0], [1], [0, 0, 1, 1], [], []>} : vector<24x4xf32>, vector<4x256xf32>, vector<24x256xf32> -> vector<24x256xf32>
    %61 = arith.addf %56, %60 : vector<24x256xf32>
    %62 = vector.broadcast %23 : vector<24x1xf32> to vector<24x256xf32>
    %63 = arith.addf %61, %62 : vector<24x256xf32>
    %64 = arith.negf %63 : vector<24x256xf32>
    %65 = math.exp %64 : vector<24x256xf32>
    %cst_45 = arith.constant 1.000000e+00 : f32
    %66 = vector.broadcast %cst_45 : f32 to vector<24x256xf32>
    %67 = arith.addf %66, %65 : vector<24x256xf32>
    %68 = arith.divf %66, %67 : vector<24x256xf32>
    %69 = arith.mulf %63, %68 : vector<24x256xf32>
    %c0_46 = arith.constant 0 : index
    %c0_47 = arith.constant 0 : index
    %c0_48 = arith.constant 0 : index
    %70 = vector.load %arg6[%c0_46, %c0_47, %c0_48] : memref<2x24x256xf32, #tpu.memory_space<vmem>>, vector<1x24x256xf32>
    %71 = vector.shape_cast %70 : vector<1x24x256xf32> to vector<24x256xf32>
    %72 = vector.shape_cast %69 : vector<24x256xf32> to vector<1x24x256xf32>
    tpu.vector_store %arg6[%c0_46, %c0_47, %c0_48], %72 {strides = array<i32>} : memref<2x24x256xf32, #tpu.memory_space<vmem>>, vector<1x24x256xf32>,
    %c4_49 = arith.constant 4 : index
    %c0_50 = arith.constant 0 : index
    %73 = vector.load %arg7[%c4_49, %c0_50] : memref<8x290xf32, #tpu.memory_space<vmem>>, vector<4x256xf32>
    %74 = vector.broadcast %3 : vector<1x256xf32> to vector<4x256xf32>
    %75 = arith.mulf %73, %74 : vector<4x256xf32>
    %cst_51 = arith.constant dense<0.000000e+00> : vector<24x256xf32>
    %76 = tpu.matmul %6, %75, %cst_51 {dimension_numbers = #tpu.dot_dimension_numbers<[1], [0], [0], [1], [0, 0, 1, 1], [], []>} : vector<24x4xf32>, vector<4x256xf32>, vector<24x256xf32> -> vector<24x256xf32>
    %c4_52 = arith.constant 4 : index
    %c1_53 = arith.constant 1 : index
    %77 = vector.load %arg7[%c4_52, %c1_53] : memref<8x290xf32, #tpu.memory_space<vmem>>, vector<4x256xf32>
    %cst_54 = arith.constant dense<0.000000e+00> : vector<24x256xf32>
    %78 = tpu.matmul %8, %77, %cst_54 {dimension_numbers = #tpu.dot_dimension_numbers<[1], [0], [0], [1], [0, 0, 1, 1], [], []>} : vector<24x4xf32>, vector<4x256xf32>, vector<24x256xf32> -> vector<24x256xf32>
    %79 = arith.addf %76, %78 : vector<24x256xf32>
    %c4_55 = arith.constant 4 : index
    %c2_56 = arith.constant 2 : index
    %80 = vector.load %arg7[%c4_55, %c2_56] : memref<8x290xf32, #tpu.memory_space<vmem>>, vector<4x256xf32>
    %81 = vector.broadcast %4 : vector<1x256xf32> to vector<4x256xf32>
    %82 = arith.mulf %80, %81 : vector<4x256xf32>
    %cst_57 = arith.constant dense<0.000000e+00> : vector<24x256xf32>
    %83 = tpu.matmul %10, %82, %cst_57 {dimension_numbers = #tpu.dot_dimension_numbers<[1], [0], [0], [1], [0, 0, 1, 1], [], []>} : vector<24x4xf32>, vector<4x256xf32>, vector<24x256xf32> -> vector<24x256xf32>
    %84 = arith.addf %79, %83 : vector<24x256xf32>
    %c4_58 = arith.constant 4 : index
    %c16_59 = arith.constant 16 : index
    %85 = vector.load %arg7[%c4_58, %c16_59] : memref<8x290xf32, #tpu.memory_space<vmem>>, vector<4x256xf32>
    %86 = vector.broadcast %3 : vector<1x256xf32> to vector<4x256xf32>
    %87 = arith.mulf %85, %86 : vector<4x256xf32>
    %cst_60 = arith.constant dense<0.000000e+00> : vector<24x256xf32>
    %88 = tpu.matmul %12, %87, %cst_60 {dimension_numbers = #tpu.dot_dimension_numbers<[1], [0], [0], [1], [0, 0, 1, 1], [], []>} : vector<24x4xf32>, vector<4x256xf32>, vector<24x256xf32> -> vector<24x256xf32>
    %89 = arith.addf %84, %88 : vector<24x256xf32>
    %c4_61 = arith.constant 4 : index
    %c17_62 = arith.constant 17 : index
    %90 = vector.load %arg7[%c4_61, %c17_62] : memref<8x290xf32, #tpu.memory_space<vmem>>, vector<4x256xf32>
    %cst_63 = arith.constant dense<0.000000e+00> : vector<24x256xf32>
    %91 = tpu.matmul %14, %90, %cst_63 {dimension_numbers = #tpu.dot_dimension_numbers<[1], [0], [0], [1], [0, 0, 1, 1], [], []>} : vector<24x4xf32>, vector<4x256xf32>, vector<24x256xf32> -> vector<24x256xf32>
    %92 = arith.addf %89, %91 : vector<24x256xf32>
    %c4_64 = arith.constant 4 : index
    %c18_65 = arith.constant 18 : index
    %93 = vector.load %arg7[%c4_64, %c18_65] : memref<8x290xf32, #tpu.memory_space<vmem>>, vector<4x256xf32>
    %94 = vector.broadcast %4 : vector<1x256xf32> to vector<4x256xf32>
    %95 = arith.mulf %93, %94 : vector<4x256xf32>
    %cst_66 = arith.constant dense<0.000000e+00> : vector<24x256xf32>
    %96 = tpu.matmul %16, %95, %cst_66 {dimension_numbers = #tpu.dot_dimension_numbers<[1], [0], [0], [1], [0, 0, 1, 1], [], []>} : vector<24x4xf32>, vector<4x256xf32>, vector<24x256xf32> -> vector<24x256xf32>
    %97 = arith.addf %92, %96 : vector<24x256xf32>
    %c4_67 = arith.constant 4 : index
    %c32_68 = arith.constant 32 : index
    %98 = vector.load %arg7[%c4_67, %c32_68] : memref<8x290xf32, #tpu.memory_space<vmem>>, vector<4x256xf32>
    %99 = vector.broadcast %3 : vector<1x256xf32> to vector<4x256xf32>
    %100 = arith.mulf %98, %99 : vector<4x256xf32>
    %cst_69 = arith.constant dense<0.000000e+00> : vector<24x256xf32>
    %101 = tpu.matmul %18, %100, %cst_69 {dimension_numbers = #tpu.dot_dimension_numbers<[1], [0], [0], [1], [0, 0, 1, 1], [], []>} : vector<24x4xf32>, vector<4x256xf32>, vector<24x256xf32> -> vector<24x256xf32>
    %102 = arith.addf %97, %101 : vector<24x256xf32>
    %c4_70 = arith.constant 4 : index
    %c33_71 = arith.constant 33 : index
    %103 = vector.load %arg7[%c4_70, %c33_71] : memref<8x290xf32, #tpu.memory_space<vmem>>, vector<4x256xf32>
    %cst_72 = arith.constant dense<0.000000e+00> : vector<24x256xf32>
    %104 = tpu.matmul %20, %103, %cst_72 {dimension_numbers = #tpu.dot_dimension_numbers<[1], [0], [0], [1], [0, 0, 1, 1], [], []>} : vector<24x4xf32>, vector<4x256xf32>, vector<24x256xf32> -> vector<24x256xf32>
    %105 = arith.addf %102, %104 : vector<24x256xf32>
    %c4_73 = arith.constant 4 : index
    %c34_74 = arith.constant 34 : index
    %106 = vector.load %arg7[%c4_73, %c34_74] : memref<8x290xf32, #tpu.memory_space<vmem>>, vector<4x256xf32>
    %107 = vector.broadcast %4 : vector<1x256xf32> to vector<4x256xf32>
    %108 = arith.mulf %106, %107 : vector<4x256xf32>
    %cst_75 = arith.constant dense<0.000000e+00> : vector<24x256xf32>
    %109 = tpu.matmul %22, %108, %cst_75 {dimension_numbers = #tpu.dot_dimension_numbers<[1], [0], [0], [1], [0, 0, 1, 1], [], []>} : vector<24x4xf32>, vector<4x256xf32>, vector<24x256xf32> -> vector<24x256xf32>
    %110 = arith.addf %105, %109 : vector<24x256xf32>
    %111 = vector.broadcast %23 : vector<24x1xf32> to vector<24x256xf32>
    %112 = arith.addf %110, %111 : vector<24x256xf32>
    %113 = arith.negf %112 : vector<24x256xf32>
    %114 = math.exp %113 : vector<24x256xf32>
    %cst_76 = arith.constant 1.000000e+00 : f32
    %115 = vector.broadcast %cst_76 : f32 to vector<24x256xf32>
    %116 = arith.addf %115, %114 : vector<24x256xf32>
    %117 = arith.divf %115, %116 : vector<24x256xf32>
    %118 = arith.mulf %112, %117 : vector<24x256xf32>
    %c1_77 = arith.constant 1 : index
    %c0_78 = arith.constant 0 : index
    %c0_79 = arith.constant 0 : index
    %119 = vector.load %arg6[%c1_77, %c0_78, %c0_79] : memref<2x24x256xf32, #tpu.memory_space<vmem>>, vector<1x24x256xf32>
    %120 = vector.shape_cast %119 : vector<1x24x256xf32> to vector<24x256xf32>
    %121 = vector.shape_cast %118 : vector<24x256xf32> to vector<1x24x256xf32>
    tpu.vector_store %arg6[%c1_77, %c0_78, %c0_79], %121 {strides = array<i32>} : memref<2x24x256xf32, #tpu.memory_space<vmem>>, vector<1x24x256xf32>,
    return
  }
  func.func @transform_0(%arg0: i32, %arg1: i32) -> (i32, i32, i32) {
    %c0_i32 = arith.constant 0 : i32
    %c0_i32_0 = arith.constant 0 : i32
    %c0_i32_1 = arith.constant 0 : i32
    return %arg0, %c0_i32, %c0_i32_0 : i32, i32, i32
  }
  func.func @transform_1(%arg0: i32, %arg1: i32) -> (i32, i32, i32) {
    %c0_i32 = arith.constant 0 : i32
    %c0_i32_0 = arith.constant 0 : i32
    %c0_i32_1 = arith.constant 0 : i32
    return %c0_i32, %arg1, %c0_i32_0 : i32, i32, i32
  }
  func.func @transform_2(%arg0: i32, %arg1: i32) -> (i32, i32) {
    %c0_i32 = arith.constant 0 : i32
    %c0_i32_0 = arith.constant 0 : i32
    return %arg1, %c0_i32 : i32, i32
  }
  func.func @transform_3(%arg0: i32, %arg1: i32) -> (i32, i32) {
    %c0_i32 = arith.constant 0 : i32
    %c0_i32_0 = arith.constant 0 : i32
    %c0_i32_1 = arith.constant 0 : i32
    return %c0_i32, %c0_i32_0 : i32, i32
  }
  func.func @transform_4(%arg0: i32, %arg1: i32) -> (i32, i32, i32) {
    %c0_i32 = arith.constant 0 : i32
    %c0_i32_0 = arith.constant 0 : i32
    return %arg0, %arg1, %c0_i32 : i32, i32, i32
  }
}

</mosaic_0001>

<bundles_post_ra>
// kernel: tpu_custom_call.1
= control target key start
LH: loop header
LB: loop body
LE: loop exit
PB: predicated region body
PF: predicated region fallthrough
CT: control target
= control target key end

     0   :  { %9 = vsyncpa [#allocation4], 0  ;;  %s3714_s0 = inlined_call_operand.vmem [shape: f32[4,4,256], index: 0, kind: input, shape index: {}]   ;;  %s3715_s1 = inlined_call_operand.vmem [shape: f32[9,24,4], index: 1, kind: input, shape index: {}]   ;;  %s3716_s2 = inlined_call_operand.vmem [shape: f32[24,1], index: 2, kind: input, shape index: {}]   ;;  %s3717_s3 = inlined_call_operand.vmem [shape: f32[2,256], index: 3, kind: input, shape index: {}]   ;;  %s3718_s4 = inlined_call_operand.hbm [shape: f32[4,24,256], index: 4, kind: output, shape index: {}]  }
   0x1   :  { %11 = vsyncpa [#allocation4 + $0x1], 0  ;;  %s2666_s15 = smov 0   ;;  %s2668_s16 = smov 0  }
   0x2   :  { %s2670_s17 = smov 0   ;;  %s2672_s18 = smov 0  }
   0x3   :  { %s2674_s19 = smov 0   ;;  %s2676_s20 = smov 0  }
   0x4 LB: > { %s2215_s21 = sadd.s32 4294967295, %s2622_s20   ;;  %s2216_s22 = sadd.s32 4294967294, %s2622_s20   ;;  %s2622_s20 = sphi %s2676_s20, %s17_s20   ;;  %s2618_s19 = sphi %s2674_s19, %s3725_s19   ;;  %s2614_s18 = sphi %s2672_s18, %s3724_s18   ;;  %s2610_s17 = sphi %s2670_s17, %s3723_s17   ;;  %s2606_s16 = sphi %s2668_s16, %s3722_s16   ;;  %s2602_s15 = sphi %s2666_s15, %s3721_s15  }
   0x5   : > { %s29_s23 = sadd.s32 1, %s2618_s19  ;;  %s137_s24 = sadd.s32 1, %s2610_s17 }
   0x6   : > { %p31_p0 = scmp.ge.s32.totalorder %s29_s23, 2  ;;  %p147_p1 = scmp.ne.s32.totalorder %s2610_s17, %s2606_s16 }
   0x7   : > { %p148_p2 = scmp.eq.s32.totalorder %s2215_s21, 1  ;;  %p153_p3 = scmp.ne.s32.totalorder %s2606_s16, %s2602_s15 }
   0x8   : > { %s3727_s23 = smov (%p31_p0, %s29_s23), 0  ;;  %p154_p5 = scmp.eq.s32.totalorder %s2216_s22, 1 }
   0x9   : > { %p2706_p4 = por %p148_p2, %p147_p1  ;;  %s132_s26 = ssub.s32 %s2618_s19, %s3727_s23 }
   0xa   : > { %p2221_p6 = scmp.ge.s32.totalorder %s2622_s20, 1  ;;  %p135_p7 = scmp.eq.s32.totalorder %s132_s26, 0 }
   0xb   : > { %p2713_p8 = por %p154_p5, %p153_p3  ;;  %p203_p9 = scmp.lt.s32.totalorder %s2622_s20, 3 }
   0xc   : > { %s2719_s28 = scalar_select %p135_p7, %s2610_s17, %s137_s24  }
   0xd   : > { %p204_p10 = pnand %p2221_p6, %p203_p9 }
   0xe   : > { %s2222_s29 = sshll.u32 (!%p204_p10), %s2614_s18, 1  ;;  %s2625_s8 = smov (!%p204_p10), 16  }
   0xf   : > { %207 = sbr.rel (%p204_p10) target bundleno = 825 (0x339), region = 36  ;;  %p241_p11 = scmp.lt.s32.totalorder (!%p204_p10), %s2222_s29, 3 }
  0x10   : > { %s2626_s10 = smov (!%p204_p10), 2   ;;  %s2627_s14 = smov (!%p204_p10), 17  }
  0x11   : > { %s2628_s21 = smov (!%p204_p10), 127   ;;  %s2629_s22 = smov (!%p204_p10), 18  }
  0x12   : > { %s2630_s24 = smov (!%p204_p10), 32   ;;  %s2631_s26 = smov (!%p204_p10), 112  }
  0x13   : > { %s2633_s30 = smov (!%p204_p10), 110   ;;  %s2634_s5 = smov (!%p204_p10), 111  }
  0x14   : > { %v307_v0 = vld [vmem:[%s3717_s3] ss:$2 sm:$0x3]  ;;  %vm265_vm0 = vcmask 138240   ;;  %v2624_v3 = vmov 0.0   ;;  %s3729_s29 = smov (!%p241_p11, %s2222_s29), 3 }
  0x15   : > { %v2725_v1 = vperm.slane %v307_v0, 0  ;;  %v2226_v2 = vld [vmem:[%s3717_s3 + $0x1] ss:$2 sm:$0x3]  ;;  %266 = vst.msk [vmem:[#allocation2] sm:$0xff] %vm265_vm0, %v2624_v3  ;;  %s2418_s9 = sshll.u32 %s3729_s29, 3 }
  0x16   : > { %v2733_v4 = vperm.slane %v2226_v2, 0  ;;  %s245_s13 = scalar_lea.vmem %s3714_s0, %s2418_s9  ;;  %v2739_v6 = vperm.slane %v307_v0, 1  ;;  %v2741_v7 = vperm.slane %v2226_v2, 1  ;;  %vm267_vm1 = vcmask 277640   ;;  %s2632_s29 = smov 126   ;;  %v2876_v2 = vld [vmem:[%s3715_s1] sm:$0xff] }
  0x17   : > { %602 = vrot.lane.b32.xlu1 %v2725_v1, %s2625_s8  ;;  %v269_v5 = vld [vmem:[%s245_s13] sm:$0xff]  ;;  %v2225_v8 = vld [vmem:[%s245_s13 + $0x8] sm:$0xff]  ;;  %268 = vst.msk [vmem:[#allocation2 + $0x10] sm:$0xff] %vm267_vm1, %v2624_v3  ;;  %vm282_vm2 = vcmask 1043592   ;;  %vm285_vm3 = vcmask 134144   ;;  %vm380_vm4 = vcmask 1043456  }
  0x18   : > { %507 = vrot.lane.b32.xlu2 %v2733_v4, %s2626_s10  ;;  %271 = vst [vmem:[#allocation1] ss:$2 sm:$0xff] %v269_v5  ;;  %vm606_vm5 = vcmask 130048   ;;  %vm511_vm6 = vcmask 15360   ;;  %vm367_vm7 = vcmask 1039360   ;;  %vm305_vm8 = vcmask 138244  }
  0x19   : > { %vm623_vm9 = vcmask 916480   ;;  %vm781_vm10 = vcmask 146432   ;;  %vm528_vm11 = vcmask 1031168   ;;  %s2635_s6 = smov 34   ;;  %vm876_vm12 = vcmask 261120   ;;  %s2636_s7 = smov 95  }
  0x1a   : > { %vm302_vm13 = vcmask 1047692   ;;  %s2637_s9 = smov 96   ;;  %vm370_vm14 = vcmask 31744   ;;  %v2887_v3 = vld [vmem:[%s3715_s1 + $0x18] sm:$0xff]  ;;  %v2905_v5 = vld [vmem:[%s3715_s1 + $0x20] sm:$0xff]  ;;  %vm798_vm15 = vcmask 900096  }
  0x1b   : > { %vm973_vm1 = vcmask 777216   ;;  %s237_s12 = sand.u32 1, %s2606_s16  }
  0x1f   : > { %604 = vrot.lane.b32.xlu1 %v2739_v6, %s2625_s8  ;;  %v272_v9 = vld.sshfl [vmem:[#allocation1] sm:$0xff pattern:$0x75316420]  ;;  %v273_v10 = vld.sshfl [vmem:[#allocation1 + $0x8] sm:$0xff pattern:$0x75316420] }
  0x20   : > { %509 = vrot.lane.b32.xlu2 %v2741_v7, %s2626_s10  ;;  %274 = vrot.lane.b32.xlu0 %v272_v9, %s2627_s14  ;;  %291 = vst [vmem:[#allocation1 + $0x1] ss:$2 sm:$0xff] %v2225_v8  ;;  %v2923_v8 = vld [vmem:[%s3715_s1 + $0x28] sm:$0xff]  ;;  %s2564_s10 = scalar_lea.hbm %s3718_s4, 192 }
  0x27   : > { %v293_v31 = vld.sshfl [vmem:[#allocation1 + $0x8] sm:$0xff pattern:$0x75316420]  ;;  %v292_v32 = vld.sshfl [vmem:[#allocation1] sm:$0xff pattern:$0x75316420] }
  0x28   : > { %276 = vrot.lane.b32.xlu0 %v273_v10, %s2627_s14  ;;  %v2934_v10 = vld [vmem:[%s3715_s1 + $0x48] sm:$0xff] }
  0x72   : > { %v2758_v17 = vpop.permute.xlu2 %507 }
  0x7a   : > { %v2780_v24 = vpop.permute.xlu2 %509 }
  0x7b   : > { %v2787_v25 = vsel %vm511_vm6, %v2758_v17, %v2780_v24 }
  0x89   : > { %v2748_v12 = vpop.permute.xlu1 %602 }
  0x91   : > { %v2762_v19 = vpop.permute.xlu1 %604 }
  0x92   : > { %v275_v11 = vpop.permute.xlu0 %274  ;;  %v2775_v22 = vsel %vm606_vm5, %v2748_v12, %v2762_v19  ;;  %vm1068_vm5 = vcmask 769024  }
  0x93   : > { %283 = vst.msk [vmem:[#allocation2] sm:$0xf] %vm282_vm2, %v275_v11  ;;  %vm1051_vm2 = vcmask 277504  }
  0x9a   : > { %v2750_v13 = vld [vmem:[#allocation2] sm:$0xf]  ;;  %v277_v14 = vpop.permute.xlu0 %276 }
  0x9b   : > { %v278_v15 = vsel %vm265_vm0, %v275_v11, %v277_v14  ;;  %286 = vst.msk [vmem:[#allocation2 + $0x10] sm:$0xf] %vm285_vm3, %v277_v14  ;;  %361 = vrot.lane.b32.xlu0 %v2750_v13, %s2628_s21  ;;  %v355_v16 = vmul.f32 %v2725_v1, %v2750_v13  ;;  %v611_v26 = vmul.f32 %v2748_v12, %v2750_v13  ;;  %vm893_vm3 = vcmask 785408  }
  0x9c   : > { %284 = vst [vmem:[#allocation2 + $0x8] sm:$0xf] %v278_v15  ;;  %v516_v29 = vmul.f32 %v2758_v17, %v2750_v13 }
  0x9d   : > { %2259 = vmatpush.msk.msra.mxu2 %vm380_vm4, %v355_v16  ;;  %v2953_v16 = vld [vmem:[%s3715_s1 + $0x30] sm:$0xff] }
  0x9e   : > { %2260 = vmatmul.msk.f32.vlgmr.msra.gmra.mxu2 %vm370_vm14, %v2876_v2 }
  0xa2   : > { %v2760_v18 = vld [vmem:[#allocation2 + $0x10] sm:$0xf] }
  0xa3   : > { %777 = vrot.lane.b32.xlu0 %v2733_v4, %s2629_s22  ;;  %365 = vrot.lane.b32.xlu2 %v2760_v18, %s2628_s21  ;;  %v2767_v20 = vld [vmem:[#allocation2 + $0x8] sm:$0xf]  ;;  %v613_v28 = vmul.f32 %v2762_v19, %v2760_v18  ;;  %v518_v30 = vmul.f32 %v2780_v24, %v2760_v18 }
  0xa4   : > { %363 = vrot.lane.b32.xlu1 %v2767_v20, %s2628_s21  ;;  %v356_v21 = vmul.f32 %v2739_v6, %v2767_v20  ;;  %v612_v23 = vmul.f32 %v2775_v22, %v2767_v20  ;;  %v517_v27 = vmul.f32 %v2787_v25, %v2767_v20 }
  0xa6   : > { %2263 = vmatpush.msk.msra.mxu3 %vm380_vm4, %v356_v21  ;;  %v2964_v21 = vld [vmem:[%s3715_s1 + $0x50] sm:$0xff] }
  0xa7   : > { %2264 = vmatmul.msk.f32.vlgmr.msra.gmra.mxu3 %vm370_vm14, %v2876_v2 }
  0xab   : > { %872 = vrot.lane.b32.xlu2 %v2725_v1, %s2630_s24  ;;  %619 = vrot.lane.b32.xlu0 %v612_v23, %s2631_s26  ;;  %v2973_v23 = vld [vmem:[%s3715_s1 + $0x38] sm:$0xff] }
  0xac   : > { %779 = vrot.lane.b32.xlu1 %v2741_v7, %s2629_s22  ;;  %s2093_s22 = scalar_lea.sflag [#allocation4], %s237_s12 }
  0xb3   : > { %617 = vrot.lane.b32.xlu2 %v611_v26, %s2631_s26  ;;  %524 = vrot.lane.b32.xlu0 %v517_v27, %s2632_s29  ;;  %v2982_v26 = vld [vmem:[%s3715_s1 + $0x58] sm:$0xff]  ;;  %v2991_v27 = vld [vmem:[%s3715_s1 + $0x40] sm:$0xff] }
  0xb4   : > { %621 = vrot.lane.b32.xlu1 %v613_v28, %s2631_s26 }
  0xbb   : > { %522 = vrot.lane.b32.xlu2 %v516_v29, %s2632_s29  ;;  %874 = vrot.lane.b32.xlu0 %v2739_v6, %s2630_s24 }
  0xbc   : > { %526 = vrot.lane.b32.xlu1 %v518_v30, %s2632_s29 }
  0xc3   : > { %296 = vrot.lane.b32.xlu2 %v293_v31, %s2627_s14 }
  0xc4   : > { %294 = vrot.lane.b32.xlu1 %v292_v32, %s2627_s14  ;;  %v3000_v32 = vld [vmem:[%s3715_s1 + $0x78] sm:$0xff]  ;;  %s2638_s14 = smov 94  }
  0xfd   : > { %v366_v33 = vpop.permute.xlu2 %365 }
 0x105   : > { %v2807_v34 = vpop.permute.xlu2 %872 }
 0x106   : > { %v881_v59 = vmul.f32 %v2807_v34, %v2750_v13 }
 0x10d   : > { %v618_v35 = vpop.permute.xlu2 %617  ;;  %v362_v36 = vpop.permute.xlu0 %361 }
 0x115   : > { %v523_v37 = vpop.permute.xlu2 %522  ;;  %v2809_v38 = vpop.permute.xlu0 %777 }
 0x116   : > { %v786_v39 = vmul.f32 %v2809_v38, %v2750_v13  ;;  %v364_v40 = vpop.permute.xlu1 %363 }
 0x117   : > { %v368_v41 = vsel %vm367_vm7, %v362_v36, %v364_v40  ;;  %v369_v42 = vsel %vm367_vm7, %v364_v40, %v366_v33 }
 0x118   : > { %2251 = vmatpush.msk.msra.mxu0 %vm380_vm4, %v368_v41  ;;  %2255 = vmatpush.msk.msra.mxu1 %vm380_vm4, %v369_v42  ;;  %v3017_v41 = vld [vmem:[%s3715_s1 + $0x60] sm:$0xff] }
 0x119   : > { %792 = vrot.lane.b32.xlu0 %v786_v39, %s2633_s30  ;;  %2252 = vmatmul.msk.f32.vlgmr.msra.gmra.mxu0 %vm370_vm14, %v2887_v3 }
 0x11a   : > { %2256 = vmatmul.msk.f32.vlgmr.msra.gmra.mxu1 %vm370_vm14, %v2887_v3 }
 0x11d   : > { %v620_v43 = vpop.permute.xlu0 %619  ;;  %v297_v44 = vpop.permute.xlu2 %296 }
 0x11e   : > { %306 = vst.msk [vmem:[#allocation2 + $0x10] sm:$0xf0] %vm305_vm8, %v297_v44  ;;  %v2818_v45 = vpop.permute.xlu1 %779  ;;  %v624_v46 = vsel %vm623_vm9, %v618_v35, %v620_v43 }
 0x11f   : > { %v2823_v47 = vsel %vm781_vm10, %v2809_v38, %v2818_v45  ;;  %v788_v48 = vmul.f32 %v2818_v45, %v2760_v18  ;;  %2275 = vmatpush.msk.msrb.mxu2 %vm380_vm4, %v624_v46 }
 0x120   : > { %v787_v49 = vmul.f32 %v2823_v47, %v2767_v20 }
 0x121   : > { %697 = vrot.lane.b32.xlu0 %v2750_v13, %s2634_s5  ;;  %796 = vrot.lane.b32.xlu2 %v788_v48, %s2633_s30 }
 0x122   : > { %794 = vrot.lane.b32.xlu1 %v787_v49, %s2633_s30  ;;  %2253 = vmatmul.msk.f32.gmra.mxu0 %vm370_vm14, %v2905_v5 }
 0x123   : > { %2257 = vmatmul.msk.f32.gmra.mxu1 %vm370_vm14, %v2905_v5 }
 0x125   : > { %v525_v50 = vpop.permute.xlu0 %524  ;;  %v2943_v14 = vld [vmem:[#allocation2 + $0x10] sm:$0xf0] }
 0x126   : > { %v622_v51 = vpop.permute.xlu1 %621  ;;  %v529_v52 = vsel %vm528_vm11, %v523_v37, %v525_v50  ;;  %v2948_v15 = vrot.slane %v2943_v14, 4 }
 0x127   : > { %2267 = vmatpush.msk.msrb.mxu0 %vm380_vm4, %v529_v52  ;;  %v625_v53 = vsel %vm623_vm9, %v620_v43, %v622_v51 }
 0x128   : > { %2279 = vmatpush.msk.msrb.mxu3 %vm380_vm4, %v625_v53 }
 0x129   : > { %1047 = vrot.lane.b32.xlu0 %v2733_v4, %s2635_s6  ;;  %701 = vrot.lane.b32.xlu2 %v2760_v18, %s2634_s5  ;;  %v2896_v4 = vld [vmem:[%s3715_s1 + $0x8] sm:$0xff] }
 0x12a   : > { %699 = vrot.lane.b32.xlu1 %v2767_v20, %s2634_s5  ;;  %2261 = vmatmul.msk.f32.gmra.mxu2 %vm370_vm14, %v2896_v4 }
 0x12b   : > { %2265 = vmatmul.msk.f32.gmra.mxu3 %vm370_vm14, %v2896_v4  ;;  %2254 = vmatmul.msk.f32.gmra.mxu0 %vm370_vm14, %v2923_v8 }
 0x12c   : > { %2258 = vmatmul.msk.f32.gmra.mxu1 %vm370_vm14, %v2923_v8 }
 0x12d   : > { %v2845_v56 = vpop.permute.xlu0 %874 }
 0x12e   : > { %v527_v54 = vpop.permute.xlu1 %526  ;;  %v2854_v57 = vsel %vm876_vm12, %v2807_v34, %v2845_v56  ;;  %v883_v62 = vmul.f32 %v2845_v56, %v2760_v18 }
 0x12f   : > { %v530_v55 = vsel %vm528_vm11, %v525_v50, %v527_v54  ;;  %v882_v61 = vmul.f32 %v2854_v57, %v2767_v20 }
 0x130   : > { %2271 = vmatpush.msk.msrb.mxu1 %vm380_vm4, %v530_v55  ;;  %v3060_v55 = vld [vmem:[%s3715_s1 + $0x88] sm:$0xff] }
 0x131   : > { %969 = vrot.lane.b32.xlu0 %v2767_v20, %s2636_s7  ;;  %967 = vrot.lane.b32.xlu2 %v2750_v13, %s2636_s7 }
 0x132   : > { %1049 = vrot.lane.b32.xlu1 %v2741_v7, %s2635_s6  ;;  %v2914_v7 = vld [vmem:[%s3715_s1 + $0x10] sm:$0xff] }
 0x133   : > { %2262 = vmatmul.msk.f32.gmra.mxu2 %vm370_vm14, %v2914_v7  ;;  %2266 = vmatmul.msk.f32.gmra.mxu3 %vm370_vm14, %v2914_v7 }
 0x134   : > { %2268 = vmatmul.msk.f32.vlgmr.msrb.gmra.mxu0 %vm370_vm14, %v2953_v16  ;;  %2272 = vmatmul.msk.f32.vlgmr.msrb.gmra.mxu1 %vm370_vm14, %v2953_v16 }
 0x136   : > { %v295_v58 = vpop.permute.xlu1 %294 }
 0x137   : > { %v298_v60 = vsel %vm265_vm0, %v295_v58, %v297_v44  ;;  %303 = vst.msk [vmem:[#allocation2] sm:$0xf0] %vm302_vm13, %v295_v58  ;;  %vm703_vm0 = vcmask 908288   ;;  %v3024_v44 = vld [vmem:[%s3715_s1 + $0x80] sm:$0xff] }
 0x138   : > { %304 = vst [vmem:[#allocation2 + $0x8] sm:$0xf0] %v298_v60 }
 0x139   : > { %889 = vrot.lane.b32.xlu0 %v882_v61, %s2637_s9  ;;  %887 = vrot.lane.b32.xlu2 %v881_v59, %s2637_s9 }
 0x13a   : > { %971 = vrot.lane.b32.xlu1 %v2760_v18, %s2636_s7 }
 0x13b   : > { %2276 = vmatmul.msk.f32.vlgmr.msrb.gmra.mxu2 %vm370_vm14, %v2934_v10  ;;  %2280 = vmatmul.msk.f32.vlgmr.msrb.gmra.mxu3 %vm370_vm14, %v2934_v10 }
 0x13c   : > { %2269 = vmatmul.msk.f32.gmra.mxu0 %vm370_vm14, %v2973_v23  ;;  %2273 = vmatmul.msk.f32.gmra.mxu1 %vm370_vm14, %v2973_v23 }
 0x13e   : > { %v2929_v9 = vld [vmem:[#allocation2] sm:$0xf0] }
 0x13f   : > { %v2868_v63 = vld [vmem:[#allocation2 + $0x8] sm:$0xf0]  ;;  %v2937_v11 = vrot.slane %v2929_v9, 4 }
 0x140   : > { %v2871_v0 = vrot.slane %v2868_v63, 4 }
 0x141   : > { %1300 = vrot.lane.b32.xlu2 %v2937_v11, %s2628_s21 }
 0x142   : > { %891 = vrot.lane.b32.xlu1 %v883_v62, %s2637_s9  ;;  %1302 = vrot.lane.b32.xlu0 %v2871_v0, %s2628_s21  ;;  %v3080_v62 = vld [vmem:[%s3715_s1 + $0x70] sm:$0xff] }
 0x143   : > { %2277 = vmatmul.msk.f32.gmra.mxu2 %vm370_vm14, %v2964_v21  ;;  %2281 = vmatmul.msk.f32.gmra.mxu3 %vm370_vm14, %v2964_v21 }
 0x144   : > { %2270 = vmatmul.msk.f32.gmra.mxu0 %vm370_vm14, %v2991_v27  ;;  %2274 = vmatmul.msk.f32.gmra.mxu1 %vm370_vm14, %v2991_v27 }
 0x14a   : > { %1304 = vrot.lane.b32.xlu1 %v2948_v15, %s2628_s21 }
 0x14b   : > { %2278 = vmatmul.msk.f32.gmra.mxu2 %vm370_vm14, %v2982_v26  ;;  %2282 = vmatmul.msk.f32.gmra.mxu3 %vm370_vm14, %v2982_v26 }
 0x17b   : > { %v797_v29 = vpop.permute.xlu2 %796 }
 0x183   : > { %v702_v36 = vpop.permute.xlu2 %701 }
 0x18b   : > { %v793_v28 = vpop.permute.xlu0 %792  ;;  %v968_v46 = vpop.permute.xlu2 %967 }
 0x193   : > { %v698_v30 = vpop.permute.xlu0 %697  ;;  %v888_v58 = vpop.permute.xlu2 %887 }
 0x194   : > { %v795_v31 = vpop.permute.xlu1 %794 }
 0x195   : > { %v799_v33 = vsel %vm798_vm15, %v793_v28, %v795_v31  ;;  %v800_v35 = vsel %vm798_vm15, %v795_v31, %v797_v29  ;;  %v3090_v29 = vld [vmem:[%s3715_s1 + $0xa8] sm:$0xff] }
 0x196   : > { %2291 = vmatpush.msk.msra.mxu2 %vm380_vm4, %v799_v33  ;;  %2295 = vmatpush.msk.msra.mxu3 %vm380_vm4, %v800_v35  ;;  %v3107_v35 = vld [vmem:[%s3715_s1 + $0x90] sm:$0xff] }
 0x197   : > { %2292 = vmatmul.msk.f32.vlgmr.msra.gmra.mxu2 %vm370_vm14, %v3000_v32  ;;  %2296 = vmatmul.msk.f32.vlgmr.msra.gmra.mxu3 %vm370_vm14, %v3000_v32 }
 0x19b   : > { %v3010_v37 = vpop.permute.xlu0 %1047 }
 0x19c   : > { %v1056_v39 = vmul.f32 %v3010_v37, %v2750_v13  ;;  %v700_v40 = vpop.permute.xlu1 %699  ;;  %v1424_v13 = vmul.f32 %v2929_v9, %v2758_v17  ;;  %v3045_v17 = vld [vmem:[%s3715_s1 + $0x68] sm:$0xff] }
 0x19d   : > { %v704_v42 = vsel %vm703_vm0, %v698_v30, %v700_v40  ;;  %v705_v43 = vsel %vm703_vm0, %v700_v40, %v702_v36  ;;  %v1503_v30 = vmul.f32 %v2929_v9, %v2748_v12  ;;  %v3115_v12 = vld [vmem:[%s3715_s1 + $0xb0] sm:$0xff]  ;;  %v1505_v40 = vmul.f32 %v2943_v14, %v2762_v19  ;;  %v3144_v19 = vld [vmem:[%s3715_s1 + $0xb8] sm:$0xff] }
 0x19e   : > { %1062 = vrot.lane.b32.xlu2 %v1056_v39, %s2638_s14  ;;  %2283 = vmatpush.msk.msra.mxu0 %vm380_vm4, %v704_v42  ;;  %v1430_v51 = vrot.slane %v1424_v13, 4  ;;  %v1731_v39 = vmul.f32 %v2929_v9, %v2807_v34  ;;  %v1504_v42 = vmul.f32 %v2868_v63, %v2775_v22  ;;  %v3138_v34 = vld [vmem:[%s3715_s1 + $0x98] sm:$0xff]  ;;  %v1652_v22 = vmul.f32 %v2929_v9, %v2809_v38  ;;  %v3165_v38 = vld [vmem:[%s3715_s1 + $0xa0] sm:$0xff] }
 0x19f   : > { %2287 = vmatpush.msk.msra.mxu1 %vm380_vm4, %v705_v43  ;;  %2284 = vmatmul.msk.f32.vlgmr.msra.gmra.mxu0 %vm370_vm14, %v3017_v41  ;;  %v1509_v33 = vrot.slane %v1503_v30, 4  ;;  %v1511_v13 = vrot.slane %v1505_v40, 4  ;;  %v346_v40 = vld [vmem:[%s3716_s2 + $0x8] sm:$0xff] }
 0x1a0   : > { %2288 = vmatmul.msk.f32.vlgmr.msra.gmra.mxu1 %vm370_vm14, %v3017_v41  ;;  %2293 = vmatmul.msk.f32.gmra.mxu2 %vm370_vm14, %v3024_v44  ;;  %v1737_v43 = vrot.slane %v1731_v39, 4 }
 0x1a1   : > { %2297 = vmatmul.msk.f32.gmra.mxu3 %vm370_vm14, %v3024_v44 }
 0x1a3   : > { %v970_v48 = vpop.permute.xlu0 %969 }
 0x1a4   : > { %v974_v49 = vsel %vm973_vm1, %v968_v46, %v970_v48  ;;  %v3040_v50 = vpop.permute.xlu1 %1049  ;;  %v1510_v46 = vrot.slane %v1504_v42, 4 }
 0x1a5   : > { %2307 = vmatpush.msk.msrb.mxu2 %vm380_vm4, %v974_v49  ;;  %v3050_v52 = vsel %vm1051_vm2, %v3010_v37, %v3040_v50  ;;  %v1058_v53 = vmul.f32 %v3040_v50, %v2760_v18  ;;  %v1426_v18 = vmul.f32 %v2943_v14, %v2780_v24  ;;  %v1732_v49 = vmul.f32 %v2868_v63, %v2854_v57 }
 0x1a6   : > { %1433 = vrot.lane.b32.xlu2 %v1430_v51, %s2632_s29  ;;  %v1057_v54 = vmul.f32 %v3050_v52, %v2767_v20  ;;  %v1425_v20 = vmul.f32 %v2868_v63, %v2787_v25  ;;  %v1658_v51 = vrot.slane %v1652_v22, 4  ;;  %v1654_v57 = vmul.f32 %v2943_v14, %v2818_v45 }
 0x1a7   : > { %1066 = vrot.lane.b32.xlu1 %v1058_v53, %s2638_s14  ;;  %2285 = vmatmul.msk.f32.gmra.mxu0 %vm370_vm14, %v3045_v17  ;;  %v1432_v28 = vrot.slane %v1426_v18, 4  ;;  %v1653_v18 = vmul.f32 %v2868_v63, %v2823_v47  ;;  %v1881_v45 = vmul.f32 %v2868_v63, %v3050_v52 }
 0x1a8   : > { %1064 = vrot.lane.b32.xlu0 %v1057_v54, %s2638_s14  ;;  %2289 = vmatmul.msk.f32.gmra.mxu1 %vm370_vm14, %v3045_v17  ;;  %v1431_v25 = vrot.slane %v1425_v20, 4  ;;  %v1738_v54 = vrot.slane %v1732_v49, 4 }
 0x1a9   : > { %2294 = vmatmul.msk.f32.gmra.mxu2 %vm370_vm14, %v3060_v55  ;;  %2298 = vmatmul.msk.f32.gmra.mxu3 %vm370_vm14, %v3060_v55 }
 0x1ab   : > { %v890_v59 = vpop.permute.xlu0 %889 }
 0x1ac   : > { %v894_v60 = vsel %vm893_vm3, %v888_v58, %v890_v59  ;;  %v972_v61 = vpop.permute.xlu1 %971  ;;  %v1660_v58 = vrot.slane %v1654_v57, 4 }
 0x1ad   : > { %2299 = vmatpush.msk.msrb.mxu0 %vm380_vm4, %v894_v60  ;;  %v975_v24 = vsel %vm973_vm1, %v970_v48, %v972_v61  ;;  %v1733_v48 = vmul.f32 %v2943_v14, %v2845_v56  ;;  %v1880_v56 = vmul.f32 %v2929_v9, %v3010_v37  ;;  %v1301_v37 = vpop.permute.xlu2 %1300  ;;  %v1882_v61 = vmul.f32 %v2943_v14, %v3040_v50  ;;  %v3203_v14 = vpop.f32.mrf.mxu1 }
 0x1ae   : > { %1582 = vrot.lane.b32.xlu2 %v2937_v11, %s2634_s5  ;;  %2311 = vmatpush.msk.msrb.mxu3 %vm380_vm4, %v975_v24  ;;  %v3205_v50 = vpop.f32.mrf.mxu3 }
 0x1af   : > { %1437 = vrot.lane.b32.xlu1 %v1432_v28, %s2632_s29  ;;  %2286 = vmatmul.msk.f32.gmra.mxu0 %vm370_vm14, %v3080_v62  ;;  %v1739_v53 = vrot.slane %v1733_v48, 4  ;;  %v1886_v20 = vrot.slane %v1880_v56, 4  ;;  %v1888_v47 = vrot.slane %v1882_v61, 4  ;;  %v1887_v28 = vrot.slane %v1881_v45, 4  ;;  %v347_v48 = vld [vmem:[%s3716_s2 + $0x10] sm:$0xff]  ;;  %v3268_v45 = vpop.f32.mrf.mxu0 }
 0x1b0   : > { %1435 = vrot.lane.b32.xlu0 %v1431_v25, %s2632_s29  ;;  %2290 = vmatmul.msk.f32.gmra.mxu1 %vm370_vm14, %v3080_v62 }
 0x1b1   : > { %2308 = vmatmul.msk.f32.vlgmr.msrb.gmra.mxu2 %vm370_vm14, %v3090_v29  ;;  %2312 = vmatmul.msk.f32.vlgmr.msrb.gmra.mxu3 %vm370_vm14, %v3090_v29 }
 0x1b4   : > { %v892_v31 = vpop.permute.xlu1 %891  ;;  %v1303_v60 = vpop.permute.xlu0 %1302 }
 0x1b5   : > { %v895_v36 = vsel %vm893_vm3, %v890_v59, %v892_v31  ;;  %v1659_v59 = vrot.slane %v1653_v18, 4  ;;  %v1306_v24 = vsel %vm367_vm7, %v1301_v37, %v1303_v60  ;;  %v3211_v25 = vpop.f32.mrf.mxu1  ;;  %v3264_v37 = vld [vmem:[%s3715_s1 + $0xc8] sm:$0xff] }
 0x1b6   : > { %1512 = vrot.lane.b32.xlu2 %v1509_v33, %s2631_s26  ;;  %2303 = vmatpush.msk.msrb.mxu1 %vm380_vm4, %v895_v36 }
 0x1b7   : > { %1586 = vrot.lane.b32.xlu1 %v2948_v15, %s2634_s5  ;;  %2300 = vmatmul.msk.f32.vlgmr.msrb.gmra.mxu0 %vm370_vm14, %v3107_v35 }
 0x1b8   : > { %1584 = vrot.lane.b32.xlu0 %v2871_v0, %s2634_s5  ;;  %2304 = vmatmul.msk.f32.vlgmr.msrb.gmra.mxu1 %vm370_vm14, %v3107_v35 }
 0x1b9   : > { %2309 = vmatmul.msk.f32.gmra.mxu2 %vm370_vm14, %v3115_v12  ;;  %2313 = vmatmul.msk.f32.gmra.mxu3 %vm370_vm14, %v3115_v12 }
 0x1ba   : > { %2329 = vmatpush.msk.msra.mxu2 %vm380_vm4, %v1306_v24 }
 0x1be   : > { %1740 = vrot.lane.b32.xlu2 %v1737_v43, %s2637_s9 }
 0x1bf   : > { %1516 = vrot.lane.b32.xlu1 %v1511_v13, %s2631_s26  ;;  %2301 = vmatmul.msk.f32.gmra.mxu0 %vm370_vm14, %v3138_v34  ;;  %v1291_v13 = vmul.f32 %v2929_v9, %v2725_v1 }
 0x1c0   : > { %1514 = vrot.lane.b32.xlu0 %v1510_v46, %s2631_s26  ;;  %2305 = vmatmul.msk.f32.gmra.mxu1 %vm370_vm14, %v3138_v34  ;;  %v1292_v46 = vmul.f32 %v2868_v63, %v2739_v6  ;;  %s3548_s26 = smul.u32 96, %s237_s12 }
 0x1c1   : > { %2310 = vmatmul.msk.f32.gmra.mxu2 %vm370_vm14, %v3144_v19  ;;  %2314 = vmatmul.msk.f32.gmra.mxu3 %vm370_vm14, %v3144_v19  ;;  %v1366_v6 = vrot.slane %v1291_v13, 4 }
 0x1c2   : > { %v1367_v63 = vrot.slane %v1292_v46, 4  ;;  %s3566_s13 = scalar_lea.vmem [#allocation3], %s3548_s26 }
 0x1c6   : > { %1661 = vrot.lane.b32.xlu2 %v1658_v51, %s2633_s30  ;;  %v3242_v51 = vld [vmem:[%s3715_s1 + $0xc0] sm:$0xff] }
 0x1c7   : > { %1744 = vrot.lane.b32.xlu1 %v1739_v53, %s2637_s9  ;;  %2302 = vmatmul.msk.f32.gmra.mxu0 %vm370_vm14, %v3165_v38 }
 0x1c8   : > { %1742 = vrot.lane.b32.xlu0 %v1738_v54, %s2637_s9  ;;  %2306 = vmatmul.msk.f32.gmra.mxu1 %vm370_vm14, %v3165_v38 }
 0x1c9   : > { %2330 = vmatmul.msk.f32.vlgmr.msra.gmra.mxu2 %vm370_vm14, %v2887_v3 }
 0x1ce   : > { %1889 = vrot.lane.b32.xlu2 %v1886_v20, %s2638_s14 }
 0x1cf   : > { %1665 = vrot.lane.b32.xlu1 %v1660_v58, %s2633_s30 }
 0x1d0   : > { %1663 = vrot.lane.b32.xlu0 %v1659_v59, %s2633_s30  ;;  %v345_v59 = vld [vmem:[%s3716_s2] sm:$0xff]  ;;  %s2420_s30 = smul.u32 96, %s2614_s18  ;;  %s2109_s18 = sshll.u32 %s3566_s13, 4  ;;  %s2110_s18 = int_to_ptr.vmem [resolvable:$true] %s2109_s18 }
 0x1d1   : > { %2331 = vmatmul.msk.f32.gmra.mxu2 %vm370_vm14, %v2905_v5 }
 0x1d6   : > { %1810 = vrot.lane.b32.xlu2 %v2937_v11, %s2636_s7  ;;  %v1305_v11 = vpop.permute.xlu1 %1304 }
 0x1d7   : > { %1893 = vrot.lane.b32.xlu1 %v1888_v47, %s2638_s14  ;;  %v1307_v52 = vsel %vm367_vm7, %v1303_v60, %v1305_v11 }
 0x1d8   : > { %1891 = vrot.lane.b32.xlu0 %v1887_v28, %s2638_s14  ;;  %2333 = vmatpush.msk.msra.mxu3 %vm380_vm4, %v1307_v52  ;;  %s2108_s14 = scalar_lea.hbm %s3718_s4, %s2420_s30 }
 0x1d9   : > { %2332 = vmatmul.msk.f32.gmra.mxu2 %vm370_vm14, %v2923_v8  ;;  %2334 = vmatmul.msk.f32.vlgmr.msra.gmra.mxu3 %vm370_vm14, %v2887_v3  ;;  %v2639_v3 = vmov 0   ;;  %s2111_s21 = sshll.u32 %s2108_s14, 4  ;;  %s2112_s21 = int_to_ptr.hbm [resolvable:$true] %s2111_s21 }
 0x1da   : > { %2494 = vset.pattern.permute.xlu0 %v2639_v3  ;;  %2495 = vset.pattern.permute.xlu1 %v2639_v3  ;;  %s2558_s24 = sshra.s32 %s2112_s21, 4  ;;  %s2559_s24 = int_to_ptr.hbm [resolvable:$true] %s2558_s24 }
 0x1db   : > { %2493 = vset.pattern.permute.xlu2 %v2639_v3  ;;  %s2560_s29 = scalar_lea.hbm %s2559_s24, 96  ;;  %p2565_p1 = scmp.lt.s32.totalorder %s2559_s24, %s3718_s4 }
 0x1dc   : > { %p2561_p12 = scmp.ne.s32.totalorder %s2559_s24, %s2560_s29  ;;  %p2566_p2 = scmp.lt.s32.totalorder %s2564_s10, %s2560_s29 }
 0x1de   : > { %1144 = vperm.xlu2 %2493, %v345_v59   ;;  %p2562_p13 = pnand %p2561_p12, %p2706_p4  ;;  %p2567_p3 = por %p2566_p2, %p2565_p1 }
 0x1df   : > { %1814 = vrot.lane.b32.xlu1 %v2948_v15, %s2636_s7  ;;  %v3213_v15 = vpop.f32.mrf.mxu3 }
 0x1e0   : > { %1812 = vrot.lane.b32.xlu0 %v2871_v0, %s2636_s7  ;;  %v434_v0 = vpop.f32.mrf.mxu1  ;;  %p2563_p0 = pneg %p2562_p13 }
 0x1e1   : > { %2335 = vmatmul.msk.f32.gmra.mxu3 %vm370_vm14, %v2905_v5 }
 0x1e2   : > { %p2568_p5 = pnand %p2567_p3, %p2563_p0 }
 0x1e7   : > { %v501_v30 = vpop.f32.mrf.mxu3  ;;  %1154 = vperm.xlu1 %2495, %v347_v48  }
 0x1e8   : > { %v3219_v31 = vpop.f32.mrf.mxu1  ;;  %1149 = vperm.xlu0 %2494, %v346_v40   ;;  %v502_v43 = vadd.f32 %v501_v30, %v434_v0  ;;  %v3285_v0 = vld [vmem:[%s3715_s1 + $0xd0] sm:$0xff] }
 0x1e9   : > { %2336 = vmatmul.msk.f32.gmra.mxu3 %vm370_vm14, %v2923_v8  ;;  %v3230_v8 = vpop.f32.mrf.mxu2 }
 0x1ef   : > { %v3221_v33 = vpop.f32.mrf.mxu3 }
 0x1f0   : > { %v3223_v39 = vpop.f32.mrf.mxu1 }
 0x1f1   : > { %v3254_v18 = vpop.f32.mrf.mxu2 }
 0x1f7   : > { %v3228_v5 = vpop.f32.mrf.mxu3 }
 0x1f8   : > { %v1063_v36 = vpop.permute.xlu2 %1062  ;;  %v593_v53 = vpop.f32.mrf.mxu1 }
 0x1f9   : > { %v601_v9 = vadd.f32 %v593_v53, %v502_v43  ;;  %v3280_v47 = vpop.f32.mrf.mxu2 }
 0x1ff   : > { %v688_v56 = vpop.f32.mrf.mxu3 }
 0x200   : > { %v1434_v42 = vpop.permute.xlu2 %1433  ;;  %v3252_v57 = vadd.f32 %v688_v56, %v601_v9 }
 0x201   : > { %v3301_v40 = vpop.f32.mrf.mxu2 }
 0x208   : > { %v1583_v20 = vpop.permute.xlu2 %1582 }
 0x210   : > { %v1513_v11 = vpop.permute.xlu2 %1512 }
 0x218   : > { %v1741_v46 = vpop.permute.xlu2 %1740 }
 0x219   : > { %v1067_v22 = vpop.permute.xlu1 %1066 }
 0x21a   : > { %v1065_v49 = vpop.permute.xlu0 %1064 }
 0x21b   : > { %v1069_v54 = vsel %vm1068_vm5, %v1063_v36, %v1065_v49  ;;  %v1070_v1 = vsel %vm1068_vm5, %v1065_v49, %v1067_v22 }
 0x21c   : > { %2315 = vmatpush.msk.msra.mxu0 %vm380_vm4, %v1069_v54  ;;  %2319 = vmatpush.msk.msra.mxu1 %vm380_vm4, %v1070_v1  ;;  %v3319_v54 = vpop.f32.mrf.mxu2 }
 0x21d   : > { %2316 = vmatmul.msk.f32.vlgmr.msra.gmra.mxu0 %vm370_vm14, %v3242_v51  ;;  %2320 = vmatmul.msk.f32.vlgmr.msra.gmra.mxu1 %vm370_vm14, %v3242_v51 }
 0x21e   : > { %2337 = vmatpush.msk.msrb.mxu0 %vm380_vm4, %v1366_v6  ;;  %2341 = vmatpush.msk.msrb.mxu1 %vm380_vm4, %v1367_v63 }
 0x221   : > { %v1438_v58 = vpop.permute.xlu1 %1437 }
 0x222   : > { %v1436_v60 = vpop.permute.xlu0 %1435 }
 0x223   : > { %v1439_v61 = vsel %vm528_vm11, %v1434_v42, %v1436_v60  ;;  %v1440_v24 = vsel %vm528_vm11, %v1436_v60, %v1438_v58 }
 0x224   : > { %2345 = vmatpush.msk.msrb.mxu2 %vm380_vm4, %v1439_v61  ;;  %2349 = vmatpush.msk.msrb.mxu3 %vm380_vm4, %v1440_v24 }
 0x225   : > { %2317 = vmatmul.msk.f32.gmra.mxu0 %vm370_vm14, %v3264_v37  ;;  %2321 = vmatmul.msk.f32.gmra.mxu1 %vm370_vm14, %v3264_v37 }
 0x226   : > { %2346 = vmatmul.msk.f32.vlgmr.msrb.gmra.mxu2 %vm370_vm14, %v2953_v16  ;;  %2350 = vmatmul.msk.f32.vlgmr.msrb.gmra.mxu3 %vm370_vm14, %v2953_v16  ;;  %v3295_v16 = vpop.f32.mrf.mxu0 }
 0x229   : > { %v1587_v28 = vpop.permute.xlu1 %1586 }
 0x22a   : > { %v1585_v52 = vpop.permute.xlu0 %1584 }
 0x22b   : > { %v1588_v30 = vsel %vm703_vm0, %v1583_v20, %v1585_v52  ;;  %v1589_v36 = vsel %vm703_vm0, %v1585_v52, %v1587_v28 }
 0x22c   : > { %2361 = vmatpush.msk.msra.mxu2 %vm380_vm4, %v1588_v30  ;;  %2365 = vmatpush.msk.msra.mxu3 %vm380_vm4, %v1589_v36  ;;  %v762_v36 = vpop.f32.mrf.mxu1 }
 0x22d   : > { %2318 = vmatmul.msk.f32.gmra.mxu0 %vm370_vm14, %v3285_v0  ;;  %2322 = vmatmul.msk.f32.gmra.mxu1 %vm370_vm14, %v3285_v0 }
 0x22e   : > { %2347 = vmatmul.msk.f32.gmra.mxu2 %vm370_vm14, %v2973_v23  ;;  %2351 = vmatmul.msk.f32.gmra.mxu3 %vm370_vm14, %v2973_v23  ;;  %v3315_v23 = vpop.f32.mrf.mxu0 }
 0x231   : > { %v1517_v3 = vpop.permute.xlu1 %1516 }
 0x232   : > { %v1515_v42 = vpop.permute.xlu0 %1514 }
 0x233   : > { %v1518_v43 = vsel %vm623_vm9, %v1513_v11, %v1515_v42  ;;  %v1519_v13 = vsel %vm623_vm9, %v1515_v42, %v1517_v3 }
 0x234   : > { %2353 = vmatpush.msk.msra.mxu0 %vm380_vm4, %v1518_v43  ;;  %2357 = vmatpush.msk.msra.mxu1 %vm380_vm4, %v1519_v13 }
 0x235   : > { %2338 = vmatmul.msk.f32.vlgmr.msrb.gmra.mxu0 %vm370_vm14, %v2876_v2  ;;  %2342 = vmatmul.msk.f32.vlgmr.msrb.gmra.mxu1 %vm370_vm14, %v2876_v2  ;;  %v1662_v2 = vpop.permute.xlu2 %1661 }
 0x236   : > { %2348 = vmatmul.msk.f32.gmra.mxu2 %vm370_vm14, %v2991_v27  ;;  %2352 = vmatmul.msk.f32.gmra.mxu3 %vm370_vm14, %v2991_v27  ;;  %v3331_v1 = vpop.f32.mrf.mxu0 }
 0x239   : > { %v1745_v22 = vpop.permute.xlu1 %1744 }
 0x23a   : > { %v1743_v48 = vpop.permute.xlu0 %1742 }
 0x23b   : > { %v1746_v49 = vsel %vm893_vm3, %v1741_v46, %v1743_v48  ;;  %v1747_v53 = vsel %vm893_vm3, %v1743_v48, %v1745_v22 }
 0x23c   : > { %2377 = vmatpush.msk.msrb.mxu2 %vm380_vm4, %v1746_v49  ;;  %2381 = vmatpush.msk.msrb.mxu3 %vm380_vm4, %v1747_v53 }
 0x23d   : > { %2339 = vmatmul.msk.f32.gmra.mxu0 %vm370_vm14, %v2896_v4  ;;  %2343 = vmatmul.msk.f32.gmra.mxu1 %vm370_vm14, %v2896_v4  ;;  %v3341_v4 = vpop.f32.mrf.mxu2 }
 0x23e   : > { %2362 = vmatmul.msk.f32.vlgmr.msra.gmra.mxu2 %vm370_vm14, %v3017_v41  ;;  %2366 = vmatmul.msk.f32.vlgmr.msra.gmra.mxu3 %vm370_vm14, %v3017_v41  ;;  %v1890_v41 = vpop.permute.xlu2 %1889  ;;  %v3349_v60 = vpop.f32.mrf.mxu0 }
 0x241   : > { %v1666_v27 = vpop.permute.xlu1 %1665 }
 0x242   : > { %v1664_v9 = vpop.permute.xlu0 %1663 }
 0x243   : > { %v1667_v6 = vsel %vm798_vm15, %v1662_v2, %v1664_v9  ;;  %v1668_v63 = vsel %vm798_vm15, %v1664_v9, %v1666_v27 }
 0x244   : > { %2369 = vmatpush.msk.msrb.mxu0 %vm380_vm4, %v1667_v6  ;;  %2373 = vmatpush.msk.msrb.mxu1 %vm380_vm4, %v1668_v63 }
 0x245   : > { %2340 = vmatmul.msk.f32.gmra.mxu0 %vm370_vm14, %v2914_v7  ;;  %2344 = vmatmul.msk.f32.gmra.mxu1 %vm370_vm14, %v2914_v7  ;;  %v3361_v7 = vpop.f32.mrf.mxu2 }
 0x246   : > { %2363 = vmatmul.msk.f32.gmra.mxu2 %vm370_vm14, %v3045_v17  ;;  %2367 = vmatmul.msk.f32.gmra.mxu3 %vm370_vm14, %v3045_v17  ;;  %v3363_v17 = vpop.f32.mrf.mxu3  ;;  %v1811_v24 = vpop.permute.xlu2 %1810 }
 0x249   : > { %v1894_v56 = vpop.permute.xlu1 %1893 }
 0x24a   : > { %v1892_v20 = vpop.permute.xlu0 %1891 }
 0x24b   : > { %v1895_v58 = vsel %vm1068_vm5, %v1890_v41, %v1892_v20  ;;  %v1896_v59 = vsel %vm1068_vm5, %v1892_v20, %v1894_v56 }
 0x24c   : > { %2393 = vmatpush.msk.msra.mxu2 %vm380_vm4, %v1895_v58  ;;  %2397 = vmatpush.msk.msra.mxu3 %vm380_vm4, %v1896_v59 }
 0x24d   : > { %2354 = vmatmul.msk.f32.vlgmr.msra.gmra.mxu0 %vm370_vm14, %v2934_v10  ;;  %2358 = vmatmul.msk.f32.vlgmr.msra.gmra.mxu1 %vm370_vm14, %v2934_v10  ;;  %v3373_v10 = vpop.f32.mrf.mxu0 }
 0x24e   : > { %2364 = vmatmul.msk.f32.gmra.mxu2 %vm370_vm14, %v3080_v62  ;;  %2368 = vmatmul.msk.f32.gmra.mxu3 %vm370_vm14, %v3080_v62  ;;  %v3379_v62 = vpop.f32.mrf.mxu2  ;;  %v3381_v30 = vpop.f32.mrf.mxu3 }
 0x251   : > { %v1815_v61 = vpop.permute.xlu1 %1814 }
 0x252   : > { %v1813_v28 = vpop.permute.xlu0 %1812 }
 0x253   : > { %v1816_v11 = vsel %vm973_vm1, %v1811_v24, %v1813_v28  ;;  %v1817_v52 = vsel %vm973_vm1, %v1813_v28, %v1815_v61 }
 0x254   : > { %2385 = vmatpush.msk.msra.mxu0 %vm380_vm4, %v1816_v11  ;;  %2389 = vmatpush.msk.msra.mxu1 %vm380_vm4, %v1817_v52 }
 0x255   : > { %2355 = vmatmul.msk.f32.gmra.mxu0 %vm370_vm14, %v2964_v21  ;;  %2359 = vmatmul.msk.f32.gmra.mxu1 %vm370_vm14, %v2964_v21  ;;  %v736_v21 = vpop.f32.mrf.mxu0 }
 0x256   : > { %2378 = vmatmul.msk.f32.vlgmr.msrb.gmra.mxu2 %vm370_vm14, %v3107_v35  ;;  %2382 = vmatmul.msk.f32.vlgmr.msrb.gmra.mxu3 %vm370_vm14, %v3107_v35  ;;  %v3391_v3 = vpop.f32.mrf.mxu2  ;;  %v3393_v35 = vpop.f32.mrf.mxu3 }
 0x25d   : > { %2356 = vmatmul.msk.f32.gmra.mxu0 %vm370_vm14, %v2982_v26  ;;  %2360 = vmatmul.msk.f32.gmra.mxu1 %vm370_vm14, %v2982_v26  ;;  %v739_v26 = vpop.f32.mrf.mxu0 }
 0x25e   : > { %2379 = vmatmul.msk.f32.gmra.mxu2 %vm370_vm14, %v3138_v34  ;;  %2383 = vmatmul.msk.f32.gmra.mxu3 %vm370_vm14, %v3138_v34  ;;  %v765_v34 = vpop.f32.mrf.mxu1  ;;  %v1032_v42 = vpop.f32.mrf.mxu3 }
 0x265   : > { %2370 = vmatmul.msk.f32.vlgmr.msrb.gmra.mxu0 %vm370_vm14, %v3000_v32  ;;  %2374 = vmatmul.msk.f32.vlgmr.msrb.gmra.mxu1 %vm370_vm14, %v3000_v32  ;;  %v1006_v32 = vpop.f32.mrf.mxu2  ;;  %v3411_v43 = vpop.f32.mrf.mxu0 }
 0x266   : > { %2380 = vmatmul.msk.f32.gmra.mxu2 %vm370_vm14, %v3165_v38  ;;  %2384 = vmatmul.msk.f32.gmra.mxu3 %vm370_vm14, %v3165_v38  ;;  %v3413_v13 = vpop.f32.mrf.mxu1  ;;  %v3425_v38 = vpop.f32.mrf.mxu3 }
 0x26d   : > { %2371 = vmatmul.msk.f32.gmra.mxu0 %vm370_vm14, %v3024_v44  ;;  %2375 = vmatmul.msk.f32.gmra.mxu1 %vm370_vm14, %v3024_v44  ;;  %v3423_v44 = vpop.f32.mrf.mxu2 }
 0x26e   : > { %2394 = vmatmul.msk.f32.vlgmr.msra.gmra.mxu2 %vm370_vm14, %v3242_v51  ;;  %2398 = vmatmul.msk.f32.vlgmr.msra.gmra.mxu3 %vm370_vm14, %v3242_v51  ;;  %v926_v51 = vpop.f32.mrf.mxu0  ;;  %v952_v46 = vpop.f32.mrf.mxu1 }
 0x26f   : > { %v3441_v48 = vpop.f32.mrf.mxu3 }
 0x275   : > { %2372 = vmatmul.msk.f32.gmra.mxu0 %vm370_vm14, %v3060_v55  ;;  %2376 = vmatmul.msk.f32.gmra.mxu1 %vm370_vm14, %v3060_v55  ;;  %v470_v55 = vadd.f32 %v3230_v8, %v3268_v45  ;;  %v3439_v22 = vpop.f32.mrf.mxu2  ;;  %v473_v8 = vadd.f32 %v3254_v18, %v3295_v16  ;;  %v476_v16 = vadd.f32 %v3280_v47, %v3315_v23 }
 0x276   : > { %2395 = vmatmul.msk.f32.gmra.mxu2 %vm370_vm14, %v3264_v37  ;;  %2399 = vmatmul.msk.f32.gmra.mxu3 %vm370_vm14, %v3264_v37  ;;  %v496_v37 = vadd.f32 %v3205_v50, %v3203_v14  ;;  %v929_v45 = vpop.f32.mrf.mxu0  ;;  %v499_v14 = vadd.f32 %v3213_v15, %v3211_v25 }
 0x277   : > { %v598_v27 = vadd.f32 %v3349_v60, %v473_v8 }
 0x278   : > { %v597_v49 = vadd.f32 %v3219_v31, %v496_v37  ;;  %v3457_v31 = vpop.f32.mrf.mxu3 }
 0x279   : > { %v693_v25 = vadd.f32 %v3319_v54, %v598_v27  ;;  %v600_v54 = vadd.f32 %v3373_v10, %v476_v16 }
 0x27a   : > { %v692_v53 = vadd.f32 %v3221_v33, %v597_v49 }
 0x27b   : > { %v773_v6 = vadd.f32 %v739_v26, %v693_v25  ;;  %v695_v47 = vadd.f32 %v3341_v4, %v600_v54 }
 0x27c   : > { %v772_v9 = vadd.f32 %v762_v36, %v692_v53 }
 0x27d   : > { %2386 = vmatmul.msk.f32.vlgmr.msra.gmra.mxu0 %vm370_vm14, %v3090_v29  ;;  %2390 = vmatmul.msk.f32.vlgmr.msra.gmra.mxu1 %vm370_vm14, %v3090_v29  ;;  %v596_v29 = vadd.f32 %v3331_v1, %v470_v55  ;;  %v3455_v2 = vpop.f32.mrf.mxu2 }
 0x27e   : > { %2396 = vmatmul.msk.f32.gmra.mxu2 %vm370_vm14, %v3285_v0  ;;  %2400 = vmatmul.msk.f32.gmra.mxu3 %vm370_vm14, %v3285_v0  ;;  %v955_v0 = vpop.f32.mrf.mxu1  ;;  %v867_v18 = vadd.f32 %v3363_v17, %v772_v9  ;;  %v3519_v9 = vpop.permute.xlu1 %1154 }
 0x27f   : > { %v691_v50 = vadd.f32 %v3301_v40, %v596_v29 }
 0x280   : > { %v962_v56 = vadd.f32 %v952_v46, %v867_v18 }
 0x281   : > { %v771_v1 = vadd.f32 %v736_v21, %v691_v50 }
 0x282   : > { %v1042_v60 = vadd.f32 %v1032_v42, %v962_v56  ;;  %v3498_v42 = vpop.permute.xlu0 %1149 }
 0x283   : > { %v866_v33 = vadd.f32 %v3361_v7, %v771_v1  ;;  %v3478_v7 = vpop.permute.xlu2 %1144 }
 0x285   : > { %2387 = vmatmul.msk.f32.gmra.mxu0 %vm370_vm14, %v3115_v12  ;;  %2391 = vmatmul.msk.f32.gmra.mxu1 %vm370_vm14, %v3115_v12  ;;  %v599_v12 = vadd.f32 %v3223_v39, %v499_v14  ;;  %v932_v39 = vpop.f32.mrf.mxu0  ;;  %v961_v41 = vadd.f32 %v926_v51, %v866_v33  ;;  %v3471_v20 = vpop.f32.mrf.mxu2 }
 0x286   : > { %v958_v40 = vpop.f32.mrf.mxu1 }
 0x287   : > { %v694_v15 = vadd.f32 %v3228_v5, %v599_v12  ;;  %v868_v5 = vadd.f32 %v3379_v62, %v773_v6  ;;  %v1041_v59 = vadd.f32 %v1006_v32, %v961_v41  ;;  %v775_v62 = vadd.f32 %v3411_v43, %v695_v47 }
 0x289   : > { %v774_v63 = vadd.f32 %v765_v34, %v694_v15  ;;  %v963_v28 = vadd.f32 %v929_v45, %v868_v5  ;;  %v870_v43 = vadd.f32 %v3391_v3, %v775_v62 }
 0x28b   : > { %v869_v58 = vadd.f32 %v3381_v30, %v774_v63  ;;  %v776_v30 = vadd.f32 %v3413_v13, %v3252_v57  ;;  %v1043_v34 = vadd.f32 %v3423_v44, %v963_v28  ;;  %v965_v44 = vadd.f32 %v932_v39, %v870_v43 }
 0x28d   : > { %2388 = vmatmul.msk.f32.gmra.mxu0 %vm370_vm14, %v3144_v19  ;;  %2392 = vmatmul.msk.f32.gmra.mxu1 %vm370_vm14, %v3144_v19  ;;  %v3473_v19 = vpop.f32.mrf.mxu3  ;;  %v964_v11 = vadd.f32 %v955_v0, %v869_v58  ;;  %v3492_v36 = vpop.f32.mrf.mxu2  ;;  %v871_v13 = vadd.f32 %v3393_v35, %v776_v30  ;;  %v1045_v53 = vadd.f32 %v3439_v22, %v965_v44 }
 0x28f   : > { %v1044_v32 = vadd.f32 %v3425_v38, %v964_v11  ;;  %v966_v49 = vadd.f32 %v958_v40, %v871_v13 }
 0x291   : > { %v1046_v1 = vadd.f32 %v3441_v48, %v966_v49 }
 0x295   : > { %v3494_v26 = vpop.f32.mrf.mxu3 }
 0x29a   : > { %v1101_v23 = vpop.f32.mrf.mxu0  ;;  %v1127_v17 = vpop.f32.mrf.mxu1 }
 0x29b   : > { %v1136_v61 = vadd.f32 %v1101_v23, %v1041_v59  ;;  %v1137_v24 = vadd.f32 %v1127_v17, %v1042_v60 }
 0x29d   : > { %v3482_v52 = vadd.f32 %v3478_v7, %v1136_v61  ;;  %v3485_v10 = vadd.f32 %v3478_v7, %v1137_v24 }
 0x29f   : > { %v2323_v21 = vmul.f32 -1.442695, %v3482_v52  ;;  %v2324_v4 = vmul.f32 -1.442695, %v3485_v10 }
 0x2a1   : > { %2496 = vpow2.f32 %v2323_v21 }
 0x2a2   : > { %2498 = vpow2.f32 %v2324_v4  ;;  %v1104_v51 = vpop.f32.mrf.mxu0  ;;  %v1130_v57 = vpop.f32.mrf.mxu1 }
 0x2a3   : > { %v1138_v46 = vadd.f32 %v1104_v51, %v1043_v34  ;;  %v1139_v55 = vadd.f32 %v1130_v57, %v1044_v32 }
 0x2a5   : > { %v3503_v37 = vadd.f32 %v3498_v42, %v1138_v46  ;;  %v3506_v29 = vadd.f32 %v3498_v42, %v1139_v55 }
 0x2a7   : > { %v2497_v38 = vpop.eup %2496  ;;  %v2325_v8 = vmul.f32 -1.442695, %v3503_v37  ;;  %v2326_v0 = vmul.f32 -1.442695, %v3506_v29 }
 0x2a8   : > { %v2499_v45 = vpop.eup %2498  ;;  %v1181_v3 = vadd.f32 1.0, %v2497_v38 }
 0x2a9   : > { %v3510_v14 = vadd.f32 1.0, %v2499_v45  ;;  %2500 = vpow2.f32 %v2325_v8  ;;  %v3512_v35 = vpop.f32.mrf.mxu2  ;;  %v3514_v50 = vpop.f32.mrf.mxu3 }
 0x2aa   : > { %2502 = vrcp.f32 %v1181_v3  ;;  %v1107_v27 = vpop.f32.mrf.mxu0  ;;  %v1133_v12 = vpop.f32.mrf.mxu1  ;;  %v1196_v23 = vand.u32 2147483647, %v1181_v3  ;;  %v1198_v17 = vand.u32 2147483648, %v1181_v3  ;;  %vm1192_vm7 = vweird.f32 %v1181_v3 }
 0x2ab   : > { %2504 = vrcp.f32 %v3510_v14  ;;  %v1140_v25 = vadd.f32 %v1107_v27, %v1045_v53  ;;  %v1141_v15 = vadd.f32 %v1133_v12, %v1046_v1  ;;  %v1213_v28 = vand.u32 2147483648, %v3510_v14 }
 0x2ac   : > { %2506 = vpow2.f32 %v2326_v0  ;;  %v1211_v62 = vand.u32 2147483647, %v3510_v14  ;;  %v1199_v4 = vor.u32 1.1754944e-38, %v1198_v17  ;;  %vm1207_vm9 = vweird.f32 %v3510_v14 }
 0x2ad   : > { %v3522_v33 = vadd.f32 %v3519_v9, %v1140_v25  ;;  %v3525_v16 = vadd.f32 %v3519_v9, %v1141_v15  ;;  %vm1197_vm10 = vcmp.eq.f32.partialorder %v1196_v23, 8.507059e+37  ;;  %v1214_v43 = vor.u32 1.1754944e-38, %v1213_v28 }
 0x2ae   : > { %vm1212_vm12 = vcmp.eq.f32.partialorder %v1211_v62, 8.507059e+37 }
 0x2af   : > { %v2501_v18 = vpop.eup %2500  ;;  %v2327_v48 = vmul.f32 -1.442695, %v3522_v33  ;;  %v2328_v47 = vmul.f32 -1.442695, %v3525_v16 }
 0x2b0   : > { %v2503_v22 = vpop.eup %2502  ;;  %v3527_v39 = vadd.f32 1.0, %v2501_v18 }
 0x2b1   : > { %v2505_v40 = vpop.eup %2504  ;;  %v1188_v6 = vmul.f32 %v2503_v22, %v1181_v3  ;;  %v3530_v63 = vpop.f32.mrf.mxu2  ;;  %vm1193_vm4 = vweird.f32 %v2503_v22 }
 0x2b2   : > { %v3532_v41 = vpop.f32.mrf.mxu3  ;;  %v2507_v56 = vpop.eup %2506  ;;  %v1203_v54 = vmul.f32 %v2505_v40, %v3510_v14  ;;  %2508 = vrcp.f32 %v3527_v39  ;;  %vm1208_vm6 = vweird.f32 %v2505_v40  ;;  %vm1194_vm8 = vmor %vm1192_vm7, %vm1193_vm4  ;;  %v1228_v38 = vand.u32 2147483648, %v3527_v39 }
 0x2b3   : > { %v3536_v5 = vpop.f32.mrf.mxu0  ;;  %v3538_v58 = vpop.f32.mrf.mxu1  ;;  %v1189_v59 = vsub.f32 1.0, %v1188_v6  ;;  %v3541_v60 = vadd.f32 1.0, %v2507_v56  ;;  %2510 = vpow2.f32 %v2327_v48  ;;  %vm1209_vm11 = vmor %vm1207_vm9, %vm1208_vm6  ;;  %v1226_v15 = vand.u32 2147483647, %v3527_v39 }
 0x2b4   : > { %v1204_v61 = vsub.f32 1.0, %v1203_v54  ;;  %vm1222_vm14 = vweird.f32 %v3527_v39 }
 0x2b5   : > { %v1190_v24 = vmul.f32 %v2503_v22, %v1189_v59  ;;  %2512 = vrcp.f32 %v3541_v60  ;;  %v1243_v48 = vand.u32 2147483648, %v3541_v60  ;;  %v1241_v6 = vand.u32 2147483647, %v3541_v60 }
 0x2b6   : > { %v1205_v11 = vmul.f32 %v2505_v40, %v1204_v61  ;;  %2514 = vpow2.f32 %v2328_v47  ;;  %vm1227_vm1 = vcmp.eq.f32.partialorder %v1226_v15, 8.507059e+37  ;;  %vm1237_vm2 = vweird.f32 %v3541_v60 }
 0x2b7   : > { %v1191_v30 = vadd.f32 %v2503_v22, %v1190_v24  ;;  %v1244_v24 = vor.u32 1.1754944e-38, %v1243_v48  ;;  %vm1242_vm5 = vcmp.eq.f32.partialorder %v1241_v6, 8.507059e+37 }
 0x2b8   : > { %v2509_v21 = vpop.eup %2508  ;;  %v1206_v34 = vadd.f32 %v2505_v40, %v1205_v11 }
 0x2b9   : > { %v1195_v32 = vsel %vm1194_vm8, %v2503_v22, %v1191_v30  ;;  %v1218_v51 = vmul.f32 %v2509_v21, %v3527_v39  ;;  %v3553_v57 = vpop.f32.mrf.mxu2  ;;  %v2511_v46 = vpop.eup %2510  ;;  %vm1223_vm13 = vweird.f32 %v2509_v21 }
 0x2ba   : > { %v1494_v13 = vpop.f32.mrf.mxu3  ;;  %v1200_v55 = vsel %vm1197_vm10, %v1199_v4, %v1195_v32  ;;  %v1210_v44 = vsel %vm1209_vm11, %v2505_v40, %v1206_v34  ;;  %v3561_v53 = vadd.f32 1.0, %v2511_v46  ;;  %vm1224_vm15 = vmor %vm1222_vm14, %vm1223_vm13 }
 0x2bb   : > { %v3556_v49 = vpop.f32.mrf.mxu0  ;;  %v3558_v8 = vpop.f32.mrf.mxu1  ;;  %v1215_v3 = vsel %vm1212_vm12, %v1214_v43, %v1210_v44  ;;  %v1277_v0 = vmul.f32 %v1200_v55, %v3482_v52  ;;  %v1219_v14 = vsub.f32 1.0, %v1218_v51 }
 0x2bc   : > { %v2513_v45 = vpop.eup %2512  ;;  %v1278_v27 = vmul.f32 %v1215_v3, %v3485_v10  ;;  %2516 = vrcp.f32 %v3561_v53  ;;  %v1229_v10 = vor.u32 1.1754944e-38, %v1228_v38  ;;  %v1258_v43 = vand.u32 2147483648, %v3561_v53 }
 0x2bd   : > { %v1233_v12 = vmul.f32 %v2513_v45, %v3541_v60  ;;  %v2515_v1 = vpop.eup %2514  ;;  %1283 = vst [vmem:[%s3566_s13] sm:$0xff] %v1277_v0  ;;  %v1220_v25 = vmul.f32 %v2509_v21, %v1219_v14  ;;  %vm1238_vm0 = vweird.f32 %v2513_v45  ;;  %vm1252_vm6 = vweird.f32 %v3561_v53 }
 0x2be   : > { %1284 = vst [vmem:[%s3566_s13 + $0x8] sm:$0xff] %v1278_v27  ;;  %v1186_v18 = vadd.f32 1.0, %v2515_v1  ;;  %vm1239_vm3 = vmor %vm1237_vm2, %vm1238_vm0  ;;  %v1259_v3 = vor.u32 1.1754944e-38, %v1258_v43 }
 0x2bf   : > { %v1234_v52 = vsub.f32 1.0, %v1233_v12  ;;  %v1221_v22 = vadd.f32 %v2509_v21, %v1220_v25 }
 0x2c0   : > { %2518 = vrcp.f32 %v1186_v18  ;;  %v1271_v14 = vand.u32 2147483647, %v1186_v18  ;;  %vm1267_vm10 = vweird.f32 %v1186_v18 }
 0x2c1   : > { %v1235_v40 = vmul.f32 %v2513_v45, %v1234_v52  ;;  %v1225_v56 = vsel %vm1224_vm15, %v2509_v21, %v1221_v22  ;;  %v3575_v54 = vpop.f32.mrf.mxu2 }
 0x2c2   : > { %v3577_v59 = vpop.f32.mrf.mxu3  ;;  %v1230_v47 = vsel %vm1227_vm1, %v1229_v10, %v1225_v56  ;;  %v2517_v61 = vpop.eup %2516  ;;  %vm1272_vm12 = vcmp.eq.f32.partialorder %v1271_v14, 8.507059e+37 }
 0x2c3   : > { %v1236_v23 = vadd.f32 %v2513_v45, %v1235_v40  ;;  %v3580_v39 = vpop.f32.mrf.mxu0  ;;  %v1421_v17 = vpop.f32.mrf.mxu1  ;;  %v1279_v28 = vmul.f32 %v1230_v47, %v3503_v37  ;;  %v1248_v62 = vmul.f32 %v2517_v61, %v3561_v53  ;;  %vm1253_vm4 = vweird.f32 %v2517_v61 }
 0x2c4   : > { %v1422_v30 = vadd.f32 %v1421_v17, %v3494_v26  ;;  %v1256_v37 = vand.u32 2147483647, %v3561_v53  ;;  %vm1254_vm7 = vmor %vm1252_vm6, %vm1253_vm4 }
 0x2c5   : > { %v1240_v11 = vsel %vm1239_vm3, %v2513_v45, %v1236_v23  ;;  %1285 = vst [vmem:[%s3566_s13 + $0x10] sm:$0xff] %v1279_v28  ;;  %v1249_v34 = vsub.f32 1.0, %v1248_v62  ;;  %v1390_v28 = vadd.f32 %v3536_v5, %v3455_v2 }
 0x2c6   : > { %v1245_v21 = vsel %vm1242_vm5, %v1244_v24, %v1240_v11  ;;  %v2519_v4 = vpop.eup %2518  ;;  %v3587_v32 = vadd.f32 %v1494_v13, %v1422_v30  ;;  %vm1257_vm9 = vcmp.eq.f32.partialorder %v1256_v37, 8.507059e+37 }
 0x2c7   : > { %v1280_v60 = vmul.f32 %v1245_v21, %v3506_v29  ;;  %v1263_v51 = vmul.f32 %v2519_v4, %v1186_v18  ;;  %v1250_v46 = vmul.f32 %v2517_v61, %v1249_v34  ;;  %v1273_v29 = vand.u32 2147483648, %v1186_v18 }
 0x2c8   : > { %vm1268_vm8 = vweird.f32 %v2519_v4  ;;  %v1497_v30 = vadd.f32 %v3512_v35, %v1390_v28 }
 0x2c9   : > { %1286 = vst [vmem:[%s3566_s13 + $0x18] sm:$0xff] %v1280_v60  ;;  %v1264_v55 = vsub.f32 1.0, %v1263_v51  ;;  %v3592_v44 = vpop.f32.mrf.mxu2  ;;  %v1251_v38 = vadd.f32 %v2517_v61, %v1250_v46  ;;  %vm1269_vm11 = vmor %vm1267_vm10, %vm1268_vm8  ;;  %v1274_v25 = vor.u32 1.1754944e-38, %v1273_v29  ;;  %v1393_v51 = vadd.f32 %v3556_v49, %v3471_v20 }
 0x2ca   : > { %v3594_v26 = vpop.f32.mrf.mxu3  ;;  %v1419_v46 = vadd.f32 %v3558_v8, %v3473_v19  ;;  %v1396_v20 = vadd.f32 %v3580_v39, %v3492_v36 }
 0x2cb   : > { %v1541_v45 = vpop.f32.mrf.mxu0  ;;  %v1567_v13 = vpop.f32.mrf.mxu1  ;;  %v1265_v0 = vmul.f32 %v2519_v4, %v1264_v55  ;;  %v1255_v27 = vsel %vm1254_vm7, %v2517_v61, %v1251_v38  ;;  %v1499_v35 = vadd.f32 %v3530_v63, %v1393_v51 }
 0x2cc   : > { %v1260_v12 = vsel %vm1257_vm9, %v1259_v3, %v1255_v27  ;;  %v1576_v34 = vadd.f32 %v1541_v45, %v1497_v30 }
 0x2cd   : > { %v1266_v1 = vadd.f32 %v2519_v4, %v1265_v0  ;;  %v1281_v15 = vmul.f32 %v1260_v12, %v3522_v33 }
 0x2cf   : > { %v1270_v53 = vsel %vm1269_vm11, %v2519_v4, %v1266_v1  ;;  %1287 = vst [vmem:[%s3566_s13 + $0x20] sm:$0xff] %v1281_v15 }
 0x2d0   : > { %v1275_v52 = vsel %vm1272_vm12, %v1274_v25, %v1270_v53 }
 0x2d1   : > { %v1282_v22 = vmul.f32 %v1275_v52, %v3525_v16  ;;  %v1617_v10 = vpop.f32.mrf.mxu2  ;;  %v1416_v16 = vadd.f32 %v3538_v58, %v3457_v31  ;;  %v1646_v31 = vadd.f32 %v3575_v54, %v1576_v34 }
 0x2d2   : > { %v3600_v48 = vpop.f32.mrf.mxu3 }
 0x2d3   : > { %v1544_v40 = vpop.f32.mrf.mxu0  ;;  %v1570_v6 = vpop.f32.mrf.mxu1  ;;  %1288 = vst [vmem:[%s3566_s13 + $0x28] sm:$0xff] %v1282_v22  ;;  %v1498_v21 = vadd.f32 %v3514_v50, %v1416_v16  ;;  %v1500_v50 = vadd.f32 %v3532_v41, %v1419_v46  ;;  %v1501_v41 = vadd.f32 %v3553_v57, %v1396_v20 }
 0x2d4   : > { %v1578_v38 = vadd.f32 %v1544_v40, %v1499_v35 }
 0x2d5   : > { %v1577_v43 = vadd.f32 %v1567_v13, %v1498_v21  ;;  %v1579_v29 = vadd.f32 %v1570_v6, %v1500_v50 }
 0x2d6   : > { %v1648_v54 = vadd.f32 %v3592_v44, %v1578_v38 }
 0x2d7   : > { %v1647_v58 = vadd.f32 %v3577_v59, %v1577_v43  ;;  %v1649_v59 = vadd.f32 %v3594_v26, %v1579_v29 }
 0x2d9   : > { %v1769_v56 = vpop.f32.mrf.mxu2 }
 0x2da   : > { %v1795_v47 = vpop.f32.mrf.mxu3 }
 0x2db   : > { %v1547_v23 = vpop.f32.mrf.mxu0  ;;  %v1573_v18 = vpop.f32.mrf.mxu1 }
 0x2dc   : > { %v1580_v25 = vadd.f32 %v1547_v23, %v1501_v41  ;;  %v1581_v15 = vadd.f32 %v1573_v18, %v3587_v32 }
 0x2de   : > { %v1650_v40 = vadd.f32 %v1617_v10, %v1580_v25 }
 0x2e1   : > { %v1772_v24 = vpop.f32.mrf.mxu2 }
 0x2e2   : > { %v1798_v33 = vpop.f32.mrf.mxu3 }
 0x2e3   : > { %v1690_v17 = vpop.f32.mrf.mxu0  ;;  %v1716_v61 = vpop.f32.mrf.mxu1 }
 0x2e4   : > { %v1725_v37 = vadd.f32 %v1690_v17, %v1646_v31  ;;  %v1726_v55 = vadd.f32 %v1716_v61, %v1647_v58 }
 0x2e6   : > { %v1804_v19 = vadd.f32 %v1769_v56, %v1725_v37  ;;  %v1805_v49 = vadd.f32 %v1795_v47, %v1726_v55  ;;  %v1651_v47 = vadd.f32 %v3600_v48, %v1581_v15 }
 0x2e9   : > { %v1775_v4 = vpop.f32.mrf.mxu2 }
 0x2ea   : > { %v1801_v60 = vpop.f32.mrf.mxu3 }
 0x2eb   : > { %v1693_v11 = vpop.f32.mrf.mxu0  ;;  %v1719_v62 = vpop.f32.mrf.mxu1 }
 0x2ec   : > { %v1727_v14 = vadd.f32 %v1693_v11, %v1648_v54  ;;  %v1728_v27 = vadd.f32 %v1719_v62, %v1649_v59 }
 0x2ee   : > { %v1806_v44 = vadd.f32 %v1772_v24, %v1727_v14  ;;  %v1807_v53 = vadd.f32 %v1798_v33, %v1728_v27 }
 0x2f1   : > { %v1918_v45 = vpop.f32.mrf.mxu2 }
 0x2f2   : > { %v1944_v13 = vpop.f32.mrf.mxu3 }
 0x2f3   : > { %v1696_v2 = vpop.f32.mrf.mxu0  ;;  %v1722_v5 = vpop.f32.mrf.mxu1 }
 0x2f4   : > { %v1729_v18 = vadd.f32 %v1696_v2, %v1650_v40 }
 0x2f6   : > { %v1808_v10 = vadd.f32 %v1775_v4, %v1729_v18 }
 0x2f9   : > { %v1921_v57 = vpop.f32.mrf.mxu2 }
 0x2fa   : > { %v1947_v22 = vpop.f32.mrf.mxu3 }
 0x2fb   : > { %v1839_v8 = vpop.f32.mrf.mxu0  ;;  %v1865_v3 = vpop.f32.mrf.mxu1 }
 0x2fc   : > { %v1874_v63 = vadd.f32 %v1839_v8, %v1804_v19  ;;  %v1875_v0 = vadd.f32 %v1865_v3, %v1805_v49 }
 0x2fe   : > { %v1953_v12 = vadd.f32 %v1918_v45, %v1874_v63  ;;  %v1954_v1 = vadd.f32 %v1944_v13, %v1875_v0 }
 0x300   : > { %v3624_v36 = vadd.f32 %v1953_v12, %v3478_v7  ;;  %v3627_v39 = vadd.f32 %v1954_v1, %v3478_v7  ;;  %v1730_v7 = vadd.f32 %v1722_v5, %v1651_v47 }
 0x301   : > { %v1924_v2 = vpop.f32.mrf.mxu2 }
 0x302   : > { %v2401_v26 = vmul.f32 -1.442695, %v3624_v36  ;;  %v2402_v52 = vmul.f32 -1.442695, %v3627_v39  ;;  %v1809_v16 = vadd.f32 %v1801_v60, %v1730_v7  ;;  %v1950_v5 = vpop.f32.mrf.mxu3 }
 0x303   : > { %v1842_v6 = vpop.f32.mrf.mxu0  ;;  %v1868_v56 = vpop.f32.mrf.mxu1 }
 0x304   : > { %2520 = vpow2.f32 %v2401_v26  ;;  %v1876_v32 = vadd.f32 %v1842_v6, %v1806_v44  ;;  %v1877_v23 = vadd.f32 %v1868_v56, %v1807_v53 }
 0x305   : > { %2522 = vpow2.f32 %v2402_v52 }
 0x306   : > { %v1955_v17 = vadd.f32 %v1921_v57, %v1876_v32  ;;  %v1956_v61 = vadd.f32 %v1947_v22, %v1877_v23 }
 0x308   : > { %v3633_v24 = vadd.f32 %v1955_v17, %v3498_v42  ;;  %v3636_v33 = vadd.f32 %v1956_v61, %v3498_v42 }
 0x30a   : > { %v2521_v28 = vpop.eup %2520  ;;  %v2403_v11 = vmul.f32 -1.442695, %v3633_v24  ;;  %v2404_v30 = vmul.f32 -1.442695, %v3636_v33 }
 0x30b   : > { %v2523_v48 = vpop.eup %2522  ;;  %v1983_v62 = vadd.f32 1.0, %v2521_v28  ;;  %v1845_v21 = vpop.f32.mrf.mxu0 }
 0x30c   : > { %v1871_v34 = vpop.f32.mrf.mxu1  ;;  %v1984_v43 = vadd.f32 1.0, %v2523_v48  ;;  %2524 = vpow2.f32 %v2403_v11  ;;  %v1878_v51 = vadd.f32 %v1845_v21, %v1808_v10 }
 0x30d   : > { %v1879_v46 = vadd.f32 %v1871_v34, %v1809_v16  ;;  %2526 = vrcp.f32 %v1983_v62  ;;  %v1998_v49 = vand.u32 2147483647, %v1983_v62  ;;  %v2000_v8 = vand.u32 2147483648, %v1983_v62 }
 0x30e   : > { %2528 = vrcp.f32 %v1984_v43  ;;  %v1957_v42 = vadd.f32 %v1924_v2, %v1878_v51  ;;  %v2015_v54 = vand.u32 2147483648, %v1984_v43  ;;  %v2013_v63 = vand.u32 2147483647, %v1984_v43 }
 0x30f   : > { %2530 = vpow2.f32 %v2404_v30  ;;  %v1958_v4 = vadd.f32 %v1950_v5, %v1879_v46  ;;  %vm1994_vm15 = vweird.f32 %v1983_v62  ;;  %v2001_v14 = vor.u32 1.1754944e-38, %v2000_v8 }
 0x310   : > { %v3641_v60 = vadd.f32 %v1957_v42, %v3519_v9  ;;  %vm2009_vm1 = vweird.f32 %v1984_v43  ;;  %vm1999_vm2 = vcmp.eq.f32.partialorder %v1998_v49, 8.507059e+37  ;;  %v2016_v1 = vor.u32 1.1754944e-38, %v2015_v54 }
 0x311   : > { %v3644_v58 = vadd.f32 %v1958_v4, %v3519_v9  ;;  %vm2014_vm5 = vcmp.eq.f32.partialorder %v2013_v63, 8.507059e+37 }
 0x312   : > { %v2525_v31 = vpop.eup %2524  ;;  %v2405_v37 = vmul.f32 -1.442695, %v3641_v60 }
 0x313   : > { %v2527_v35 = vpop.eup %2526  ;;  %v3646_v50 = vadd.f32 1.0, %v2525_v31  ;;  %v2406_v19 = vmul.f32 -1.442695, %v3644_v58 }
 0x314   : > { %v2529_v55 = vpop.eup %2528  ;;  %v1990_v38 = vmul.f32 %v2527_v35, %v1983_v62  ;;  %vm1995_vm13 = vweird.f32 %v2527_v35 }
 0x315   : > { %v2531_v29 = vpop.eup %2530  ;;  %v2005_v45 = vmul.f32 %v2529_v55, %v1984_v43  ;;  %2532 = vrcp.f32 %v3646_v50  ;;  %vm2010_vm14 = vweird.f32 %v2529_v55  ;;  %vm1996_vm0 = vmor %vm1994_vm15, %vm1995_vm13  ;;  %v2030_v26 = vand.u32 2147483648, %v3646_v50 }
 0x316   : > { %v1991_v13 = vsub.f32 1.0, %v1990_v38  ;;  %v3650_v20 = vadd.f32 1.0, %v2531_v29  ;;  %2534 = vpow2.f32 %v2405_v37  ;;  %vm2011_vm3 = vmor %vm2009_vm1, %vm2010_vm14  ;;  %v2028_v18 = vand.u32 2147483647, %v3646_v50 }
 0x317   : > { %v2006_v9 = vsub.f32 1.0, %v2005_v45  ;;  %vm2024_vm6 = vweird.f32 %v3646_v50 }
 0x318   : > { %v1992_v3 = vmul.f32 %v2527_v35, %v1991_v13  ;;  %2536 = vrcp.f32 %v3650_v20  ;;  %v2045_v28 = vand.u32 2147483648, %v3650_v20  ;;  %v2043_v10 = vand.u32 2147483647, %v3650_v20 }
 0x319   : > { %v2007_v59 = vmul.f32 %v2529_v55, %v2006_v9  ;;  %2538 = vpow2.f32 %v2406_v19  ;;  %vm2029_vm9 = vcmp.eq.f32.partialorder %v2028_v18, 8.507059e+37  ;;  %vm2039_vm10 = vweird.f32 %v3650_v20 }
 0x31a   : > { %v1993_v0 = vadd.f32 %v2527_v35, %v1992_v3  ;;  %v2046_v21 = vor.u32 1.1754944e-38, %v2045_v28  ;;  %vm2044_vm12 = vcmp.eq.f32.partialorder %v2043_v10, 8.507059e+37 }
 0x31b   : > { %v2533_v41 = vpop.eup %2532  ;;  %v2008_v27 = vadd.f32 %v2529_v55, %v2007_v59 }
 0x31c   : > { %v1997_v12 = vsel %vm1996_vm0, %v2527_v35, %v1993_v0  ;;  %v2020_v25 = vmul.f32 %v2533_v41, %v3646_v50  ;;  %v2535_v15 = vpop.eup %2534  ;;  %vm2025_vm4 = vweird.f32 %v2533_v41 }
 0x31d   : > { %v2002_v44 = vsel %vm1999_vm2, %v2001_v14, %v1997_v12  ;;  %v2012_v53 = vsel %vm2011_vm3, %v2529_v55, %v2008_v27  ;;  %v1987_v6 = vadd.f32 1.0, %v2535_v15  ;;  %vm2026_vm7 = vmor %vm2024_vm6, %vm2025_vm4 }
 0x31e   : > { %v2537_v52 = vpop.eup %2536  ;;  %v2079_v57 = vmul.f32 %v2002_v44, %v3624_v36  ;;  %v2017_v22 = vsel %vm2014_vm5, %v2016_v1, %v2012_v53  ;;  %v2021_v40 = vsub.f32 1.0, %v2020_v25  ;;  %v2031_v36 = vor.u32 1.1754944e-38, %v2030_v26 }
 0x31f   : > { %v2080_v56 = vmul.f32 %v2017_v22, %v3627_v39  ;;  %v2035_v47 = vmul.f32 %v2537_v52, %v3650_v20  ;;  %v2539_v32 = vpop.eup %2538  ;;  %2540 = vrcp.f32 %v1987_v6  ;;  %vm2040_vm8 = vweird.f32 %v2537_v52 }
 0x320   : > { %2407 = vst [vmem:[%s3566_s13 + $0x30] sm:$0xff] %v2079_v57  ;;  %v2022_v23 = vmul.f32 %v2533_v41, %v2021_v40  ;;  %v1988_v17 = vadd.f32 1.0, %v2539_v32  ;;  %vm2041_vm11 = vmor %vm2039_vm10, %vm2040_vm8  ;;  %v2060_v42 = vand.u32 2147483648, %v1987_v6  ;;  %v2058_v35 = vand.u32 2147483647, %v1987_v6 }
 0x321   : > { %2408 = vst [vmem:[%s3566_s13 + $0x38] sm:$0xff] %v2080_v56  ;;  %v2036_v7 = vsub.f32 1.0, %v2035_v47  ;;  %vm2054_vm14 = vweird.f32 %v1987_v6 }
 0x322   : > { %v2023_v61 = vadd.f32 %v2533_v41, %v2022_v23  ;;  %2542 = vrcp.f32 %v1988_v17  ;;  %v2075_v37 = vand.u32 2147483648, %v1988_v17  ;;  %v2061_v55 = vor.u32 1.1754944e-38, %v2060_v42 }
 0x323   : > { %v2037_v39 = vmul.f32 %v2537_v52, %v2036_v7  ;;  %v2073_v29 = vand.u32 2147483647, %v1988_v17  ;;  %vm2059_vm1 = vcmp.eq.f32.partialorder %v2058_v35, 8.507059e+37  ;;  %vm2069_vm2 = vweird.f32 %v1988_v17 }
 0x324   : > { %v2027_v16 = vsel %vm2026_vm7, %v2533_v41, %v2023_v61  ;;  %v2076_v19 = vor.u32 1.1754944e-38, %v2075_v37 }
 0x325   : > { %v2032_v11 = vsel %vm2029_vm9, %v2031_v36, %v2027_v16  ;;  %v2038_v48 = vadd.f32 %v2537_v52, %v2037_v39  ;;  %v2541_v62 = vpop.eup %2540  ;;  %vm2074_vm5 = vcmp.eq.f32.partialorder %v2073_v29, 8.507059e+37 }
 0x326   : > { %v2081_v30 = vmul.f32 %v2032_v11, %v3633_v24  ;;  %v2050_v43 = vmul.f32 %v2541_v62, %v1987_v6  ;;  %vm2055_vm13 = vweird.f32 %v2541_v62 }
 0x327   : > { %v2042_v34 = vsel %vm2041_vm11, %v2537_v52, %v2038_v48  ;;  %vm2056_vm15 = vmor %vm2054_vm14, %vm2055_vm13 }
 0x328   : > { %2409 = vst [vmem:[%s3566_s13 + $0x40] sm:$0xff] %v2081_v30  ;;  %v2047_v51 = vsel %vm2044_vm12, %v2046_v21, %v2042_v34  ;;  %v2543_v46 = vpop.eup %2542  ;;  %v2051_v5 = vsub.f32 1.0, %v2050_v43 }
 0x329   : > { %v2082_v2 = vmul.f32 %v2047_v51, %v3636_v33  ;;  %v2065_v4 = vmul.f32 %v2543_v46, %v1988_v17  ;;  %vm2070_vm0 = vweird.f32 %v2543_v46 }
 0x32a   : > { %v2052_v31 = vmul.f32 %v2541_v62, %v2051_v5  ;;  %vm2071_vm3 = vmor %vm2069_vm2, %vm2070_vm0 }
 0x32b   : > { %2410 = vst [vmem:[%s3566_s13 + $0x48] sm:$0xff] %v2082_v2  ;;  %v2066_v24 = vsub.f32 1.0, %v2065_v4 }
 0x32c   : > { %v2053_v50 = vadd.f32 %v2541_v62, %v2052_v31 }
 0x32d   : > { %v2067_v38 = vmul.f32 %v2543_v46, %v2066_v24 }
 0x32e   : > { %v2057_v33 = vsel %vm2056_vm15, %v2541_v62, %v2053_v50 }
 0x32f   : > { %v2062_v45 = vsel %vm2059_vm1, %v2061_v55, %v2057_v33  ;;  %v2068_v13 = vadd.f32 %v2543_v46, %v2067_v38 }
 0x330   : > { %v2083_v20 = vmul.f32 %v2062_v45, %v3641_v60 }
 0x331   : > { %v2072_v49 = vsel %vm2071_vm3, %v2543_v46, %v2068_v13 }
 0x332   : > { %2411 = vst [vmem:[%s3566_s13 + $0x50] sm:$0xff] %v2083_v20  ;;  %v2077_v8 = vsel %vm2074_vm5, %v2076_v19, %v2072_v49 }
 0x333   : > { %v2084_v9 = vmul.f32 %v2077_v8, %v3644_v58 }
 0x335   : > { %2412 = vst [vmem:[%s3566_s13 + $0x58] sm:$0xff] %v2084_v9 }
 0x336   : > { %2571 = shalt.err (!%p2568_p5)
}
 0x337   : > { %s2640_s12 = smov 256  }
 0x338   : > { %2421 = dma.vmem_to_hbm [thread:$0]  (%p2706_p4), %s2110_s18, 1536, %s2112_s21, %s2093_s22, %s2640_s12, %s2640_s12, %s2625_s8  }
 0x339 PF: > { %p2427_p6 = scmp.ge.s32.totalorder %s2622_s20, 2  ;;  %s2126_s13 = sand.u32 1, %s2602_s15  }
 0x33a   : > { %s2127_s30 = scalar_lea.sflag [#allocation4], %s2126_s13 }
 0x33b   : > { %p2424_p7 = pnand %p2427_p6, %p2713_p8 }
 0x33d   : > { %p2425_p9 = pneg %p2424_p7 }
 0x33f   : > { %2597 = dma.done.wait (%p2425_p9), %s2127_s30, 1536  }
 0x340   : > { %2599 = vsyncadd (%p2425_p9), %s2127_s30, 4294965760  ;;  %s17_s20 = sadd.s32 1, %s2622_s20   ;;  %s3721_s15 = smov %s2606_s16 }
 0x341   : > { %p14_p10 = scmp.ge.s32.totalorder %s17_s20, 4   ;;  %s3722_s16 = smov %s2610_s17 }
 0x342   : > { %s3723_s17 = smov %s2719_s28  ;;  %s3724_s18 = smov %s2618_s19 }
 0x343   : > { %s3725_s19 = smov %s3727_s23  ;;  %16 = sbr.rel (!%p14_p10) target bundleno = 4 (0x4), region = 93 }
 0x348   :  { %2133 = vsyncpa [#allocation4], 1 }
 0x349   :  { %2135 = vsyncpa [#allocation4 + $0x1], 1 }

</bundles_post_ra>
